<compile_context>
chip_gen: v6e
topology: v6e:2x2x1
jax: 0.10.0
libtpu: 0.0.40
codegen_flags: <defaults>
</compile_context>

<pallas_src>
import numpy as np

import jax
import jax.numpy as jnp
from jax import lax
from jax.experimental import pallas as pl
from jax.experimental.pallas import tpu as pltpu

EPS = 1e-5


# --------------------------------------------------------------------------- #
# Kernel factory (trace-time constants baked in via closure)
# --------------------------------------------------------------------------- #
def _make_kernel(inv_count):
    f32, bf16 = jnp.float32, jnp.bfloat16

    def bn_train(h, p_ref, gamma_lane, beta_lane):
        """Training-mode BatchNorm on lane-packed data (channel = lane % C).

        One pass over h: per-lane column sums of x and x^2 scaled by 1/count,
        then a single bf16 MXU matmul with the exact 0/1 channel-mixing matrix
        (p[j,k] = [j%C == k%C]) that both reduces over the lanes of a channel
        and broadcasts the result back to every lane.  The f32 stats are split
        into hi/lo bf16 halves (stacked into one M=4 matmul) so the reduce runs
        at native bf16 rate with ~f32 accuracy.  rsqrt lands on the EUP.
        """
        s1 = jnp.sum(h, axis=0, keepdims=True)            # (1, L)
        s2 = jnp.sum(h * h, axis=0, keepdims=True)        # (1, L)
        s = jnp.concatenate([s1, s2], axis=0) * inv_count  # (2, L) f32
        s_hi = s.astype(bf16)
        s_lo = (s - s_hi.astype(f32)).astype(bf16)
        mom4 = jnp.dot(jnp.concatenate([s_hi, s_lo], axis=0), p_ref[...],
                       preferred_element_type=f32)         # (4, L)
        mom = mom4[0:2, :] + mom4[2:4, :]
        mean = mom[0:1, :]
        var = mom[1:2, :] - mean * mean                    # biased var (PyTorch)
        scale = gamma_lane * lax.rsqrt(var + EPS)
        return h * scale + (beta_lane - mean * scale)

    def kernel(x_ref, w1_ref, w2_ref, w3_ref, ph_ref, po_ref,
               vh_ref, vo_ref, rm_ref, o_ref):
        x = x_ref[...]                       # (F, R*W*Cin)  lane-dense f32
        vh = vh_ref[...]                     # (6, R*W*Ch):  b1,g1,be1,b2,g2,be2
        vo = vo_ref[...]                     # (3, R*W*Cout): b3,g3,be3

        # ---- conv1: 1x1 expand == block-diagonal bf16 matmul, f32 acc ------
        h1 = jnp.dot(x.astype(bf16), w1_ref[...],
                     preferred_element_type=f32) + vh[0:1, :]
        h1 = jnp.maximum(bn_train(h1, ph_ref, vh[1:2, :], vh[2:3, :]), 0.0)

        # ---- conv2: KxK "same" conv as ONE fused K=3*Lh matmul -------------
        # Vertical taps come from neighbouring flat rows via XLU sublane rolls
        # masked by precomputed 0/1 image-boundary rows (H zero-padding);
        # W zero-padding is baked into the band weight matrix.  No shift
        # matmuls, no padded scratch, a single MXU launch.
        F = h1.shape[0]
        has_prev = rm_ref[:, 0:1]            # (F, 1) f32; 0 on first image row
        has_next = rm_ref[:, 1:2]            # (F, 1) f32; 0 on last image row
        h1_prev = pltpu.roll(h1, 1, axis=0) * has_prev
        h1_next = pltpu.roll(h1, F - 1, axis=0) * has_next
        lhs = jnp.concatenate([h1_prev.astype(bf16), h1.astype(bf16),
                               h1_next.astype(bf16)], axis=1)   # (F, 3*Lh) bf16
        h2 = jnp.dot(lhs, w2_ref[...], preferred_element_type=f32) + vh[3:4, :]
        h2 = jnp.maximum(bn_train(h2, ph_ref, vh[4:5, :], vh[5:6, :]), 0.0)

        # ---- conv3: 1x1 project + BN + residual add ------------------------
        h3 = jnp.dot(h2.astype(bf16), w3_ref[...],
                     preferred_element_type=f32) + vo[0:1, :]
        h3 = bn_train(h3, po_ref, vo[1:2, :], vo[2:3, :])

        o_ref[...] = h3 + x                  # full-width unmasked store

    return kernel


# --------------------------------------------------------------------------- #
# Host-side operand packing (done ONCE per block, outside the call path)
# --------------------------------------------------------------------------- #
def _row_pack_factor(W, channel_dims, H):
    """Smallest R with H % R == 0 and W*C*R a multiple of 128 for every C."""
    for r in range(1, H + 1):
        if H % r == 0 and all((W * c * r) % 128 == 0 for c in channel_dims):
            return r
    raise ValueError("cannot find a lane-dense row packing for these shapes")


def _build_conv2_band_mats(w2, R, W, P):
    """Banded matrices M_delta so that out[rf] = sum_d in[rf+d] @ M_d."""
    KH, KW, Ci, Co = w2.shape
    Ls, Ld = R * W * Ci, R * W * Co
    mats = {}
    for dy in range(KH):
        for j_out in range(R):
            g = j_out + dy - P                      # source image-row offset
            delta = g // R                          # flat-row offset (floor div)
            j_in = g - delta * R
            mat = mats.setdefault(delta, np.zeros((Ls, Ld), np.float32))
            for dx in range(KW):
                for w_out in range(W):
                    w_in = w_out + dx - P
                    if 0 <= w_in < W:               # W zero-padding baked in
                        r0 = (j_in * W + w_in) * Ci
                        c0 = (j_out * W + w_out) * Co
                        mat[r0:r0 + Ci, c0:c0 + Co] += w2[dy, dx]
    return mats


def _bn_mix_matrix(L, C):
    """Exact 0/1 channel-mixing matrix; 1/count is folded into the stats."""
    lane = np.arange(L)
    return ((lane[:, None] % C) == (lane[None, :] % C)).astype(np.float32)


def _prepare_operands(params, N, H, W, Cin, hidden, Cout, R, padding):
    w1 = np.asarray(params["w1"], np.float32)
    w2 = np.asarray(params["w2"], np.float32)
    w3 = np.asarray(params["w3"], np.float32)
    RW = R * W
    F = N * H // R
    rpi = H // R                                    # flat rows per image
    Lh, Lo = RW * hidden, RW * Cout

    w1_big = np.kron(np.eye(RW, dtype=np.float32), w1)     # (RW*Cin, Lh)
    w3_big = np.kron(np.eye(RW, dtype=np.float32), w3)     # (Lh, Lo)

    # conv2 band matrices, fused along K into a single (3*Lh, Lh) weight so the
    # kernel issues one MXU launch instead of three chained into VPU adds.
    mats = _build_conv2_band_mats(w2, R, W, padding)
    assert set(mats) <= {-1, 0, 1}, "kernel/padding too large for this row pack"
    w2_cat = np.concatenate([mats.get(d, np.zeros((Lh, Lh), np.float32))
                             for d in (-1, 0, 1)], axis=0)  # (3*Lh, Lh)

    # exact 0/1 BN channel-mixing matrices (bf16-exact)
    p_h = _bn_mix_matrix(Lh, hidden)
    p_o = _bn_mix_matrix(Lo, Cout)

    # 0/1 image-boundary row masks for the rolled conv2 taps (replaces the
    # old (F,F) shift matrices):  col 0 = "row has an in-image row above it",
    # col 1 = "row has an in-image row below it".
    rf = np.arange(F)
    rowmask = np.stack([(rf % rpi) != 0, ((rf + 1) % rpi) != 0],
                       axis=1).astype(np.float32)           # (F, 2)

    tile = lambda name: np.tile(np.asarray(params[name], np.float32), RW)
    vec_h = np.stack([tile("b1"), tile("g1"), tile("be1"),
                      tile("b2"), tile("g2"), tile("be2")])
    vec_o = np.stack([tile("b3"), tile("g3"), tile("be3")])

    bf16, f32 = jnp.bfloat16, jnp.float32
    return (jnp.asarray(w1_big, bf16), jnp.asarray(w2_cat, bf16),
            jnp.asarray(w3_big, bf16),
            jnp.asarray(p_h, bf16), jnp.asarray(p_o, bf16),
            jnp.asarray(vec_h, f32), jnp.asarray(vec_o, f32),
            jnp.asarray(rowmask, f32))


# --------------------------------------------------------------------------- #
# Public builder: pack once, return a jitted apply(x_nchw) -> y_nchw closure
# --------------------------------------------------------------------------- #
def build_inverted_residual(params, input_shape, *, kernel_size=3, padding=1):
    """Packs weights / BN params / boundary masks once (host-side numpy) and
    returns a jitted apply(x) callable.  Hoisting the O(L^2) packing and the
    weight uploads out of the per-call path dominates end-to-end wall clock at
    these kernel sizes."""
    N, Cin, H, W = input_shape
    hidden = params["w1"].shape[1]
    Cout = params["w3"].shape[1]
    if Cin != Cout:
        raise ValueError("residual add requires in_channels == out_channels")
    if 2 * padding != kernel_size - 1:
        raise ValueError("only stride=1 'same' conv2 is supported")

    R = _row_pack_factor(W, (Cin, hidden, Cout), H)     # rows packed per flat row
    F = N * H // R
    Lx, Lo = R * W * Cin, R * W * Cout

    ops = _prepare_operands(params, N, H, W, Cin, hidden, Cout, R, padding)
    kernel = _make_kernel(inv_count=1.0 / float(N * H * W))

    vmem = pl.BlockSpec(memory_space=pltpu.MemorySpace.VMEM)
    call = pl.pallas_call(
        kernel,
        out_shape=jax.ShapeDtypeStruct((F, Lo), jnp.float32),
        in_specs=[vmem] * 9,
        out_specs=vmem,
        # modest limit: <= half of v7x physical VMEM, plenty for these operands
        compiler_params=pltpu.CompilerParams(vmem_limit_bytes=32 * 1024 * 1024),
    )

    @jax.jit
    def apply(x_nchw):
        # single layout conversion (NCHW -> flat lane-dense); fuses under jit
        x_flat = (jnp.transpose(x_nchw, (0, 2, 3, 1))
                  .reshape(F, Lx).astype(jnp.float32))
        out_flat = call(x_flat, *ops)
        return jnp.transpose(out_flat.reshape(N, H, W, Cout), (0, 3, 1, 2))

    return apply


# --------------------------------------------------------------------------- #
# Parameters and pure-JAX references
# --------------------------------------------------------------------------- #
def make_params(in_channels, out_channels, expand_ratio, kernel_size, key):
    hidden = in_channels * expand_ratio
    ks = jax.random.split(key, 12)
    nrm = lambda k, shape, s: jax.random.normal(k, shape, jnp.float32) * s
    return {
        "w1": nrm(ks[0], (in_channels, hidden), 0.2),
        "b1": nrm(ks[1], (hidden,), 0.1),
        "w2": nrm(ks[2], (kernel_size, kernel_size, hidden, hidden), 0.1),
        "b2": nrm(ks[3], (hidden,), 0.1),
        "w3": nrm(ks[4], (hidden, out_channels), 0.2),
        "b3": nrm(ks[5], (out_channels,), 0.1),
        # BN affine params (randomized around PyTorch init 1/0 for a stronger test)
        "g1": 1.0 + nrm(ks[6], (hidden,), 0.1), "be1": nrm(ks[7], (hidden,), 0.1),
        "g2": 1.0 + nrm(ks[8], (hidden,), 0.1), "be2": nrm(ks[9], (hidden,), 0.1),
        "g3": 1.0 + nrm(ks[10], (out_channels,), 0.1),
        "be3": nrm(ks[11], (out_channels,), 0.1),
    }


def _bn_ref(h, gamma, beta):
    mean = jnp.mean(h, axis=(0, 1, 2), keepdims=True)
    var = jnp.mean((h - mean) ** 2, axis=(0, 1, 2), keepdims=True)
    return (h - mean) * lax.rsqrt(var + EPS) * gamma + beta


def reference_nchw(x_nchw, params, *, kernel_size=3, padding=1, match_mxu=False):
    """Pure-JAX reference.  match_mxu=True models the kernel's precision policy
    (conv operands rounded to bf16, f32 accumulation, f32 BatchNorm)."""
    x = jnp.transpose(x_nchw, (0, 2, 3, 1)).astype(jnp.float32)
    dn = ("NHWC", "HWIO", "NHWC")
    rnd = ((lambda a: a.astype(jnp.bfloat16).astype(jnp.float32))
           if match_mxu else (lambda a: a))

    def conv(h, w, pad):
        return lax.conv_general_dilated(rnd(h), rnd(w), (1, 1), pad,
                                        dimension_numbers=dn,
                                        precision=lax.Precision.HIGHEST)

    h = conv(x, params["w1"][None, None], "VALID") + params["b1"]
    h = jnp.maximum(_bn_ref(h, params["g1"], params["be1"]), 0.0)
    p2 = ((padding, padding), (padding, padding))
    h = conv(h, params["w2"], p2) + params["b2"]
    h = jnp.maximum(_bn_ref(h, params["g2"], params["be2"]), 0.0)
    h = conv(h, params["w3"][None, None], "VALID") + params["b3"]
    h = _bn_ref(h, params["g3"], params["be3"])
    return jnp.transpose(h + x, (0, 3, 1, 2))


# --------------------------------------------------------------------------- #
if __name__ == "__main__":
    # InvertedResidualBlock(in=4, out=4, expand_ratio=2, stride=1, k=3, pad=1)
    in_channels, out_channels, expand_ratio = 4, 4, 2
    kernel_size, padding = 3, 1
    N, H, W = 2, 16, 16

    key = jax.random.PRNGKey(0)
    kx, kp = jax.random.split(key)
    x = jax.random.normal(kx, (N, in_channels, H, W), jnp.float32)
    params = make_params(in_channels, out_channels, expand_ratio, kernel_size, kp)

    # Pack once (host side), then call the jitted apply (no per-call repacking).
    block = build_inverted_residual(params, (N, in_channels, H, W),
                                    kernel_size=kernel_size, padding=padding)
    y = jax.block_until_ready(block(x))
    assert y.shape == x.shape, (y.shape, x.shape)

    # Tight check against a reference with the same precision policy as the
    # kernel (bf16 MXU operands, f32 accumulation, f32 BatchNorm).
    y_match = reference_nchw(x, params, kernel_size=kernel_size,
                             padding=padding, match_mxu=True)
    err_m = float(jnp.max(jnp.abs(y - y_match)))
    assert jnp.allclose(y, y_match, rtol=1e-2, atol=1e-2), err_m

    # Loose sanity check against the pure-f32 reference (only bf16 MXU rounding
    # noise separates the two; catastrophic wiring bugs would be O(1)).
    y_f32 = reference_nchw(x, params, kernel_size=kernel_size, padding=padding)
    err_f = float(jnp.max(jnp.abs(y - y_f32)))
    assert jnp.allclose(y, y_f32, rtol=1e-1, atol=1e-1), err_f

    print("KERNEL_OK")
</pallas_src>

<mosaic_0001>
module attributes {stable_mosaic.version = 11 : i64} {
  func.func @kernel(%arg0: memref<16x128xf32, #tpu.memory_space<vmem>>, %arg1: memref<128x256xbf16, #tpu.memory_space<vmem>>, %arg2: memref<768x256xbf16, #tpu.memory_space<vmem>>, %arg3: memref<256x128xbf16, #tpu.memory_space<vmem>>, %arg4: memref<256x256xbf16, #tpu.memory_space<vmem>>, %arg5: memref<128x128xbf16, #tpu.memory_space<vmem>>, %arg6: memref<6x256xf32, #tpu.memory_space<vmem>>, %arg7: memref<3x128xf32, #tpu.memory_space<vmem>>, %arg8: memref<16x2xf32, #tpu.memory_space<vmem>>, %arg9: memref<16x128xf32, #tpu.memory_space<vmem>>) attributes {dimension_semantics = [], scalar_prefetch = 0 : i64, scratch_operands = 0 : i64, tpu.core_type = #tpu.core_type<tc>} {
    %c0 = arith.constant 0 : index
    %c0_0 = arith.constant 0 : index
    %0 = vector.load %arg0[%c0, %c0_0] : memref<16x128xf32, #tpu.memory_space<vmem>>, vector<16x128xf32>
    %c0_1 = arith.constant 0 : index
    %c0_2 = arith.constant 0 : index
    %1 = vector.load %arg6[%c0_1, %c0_2] : memref<6x256xf32, #tpu.memory_space<vmem>>, vector<6x256xf32>
    %c0_3 = arith.constant 0 : index
    %c0_4 = arith.constant 0 : index
    %2 = vector.load %arg7[%c0_3, %c0_4] : memref<3x128xf32, #tpu.memory_space<vmem>>, vector<3x128xf32>
    %3 = arith.truncf %0 : vector<16x128xf32> to vector<16x128xbf16>
    %c0_5 = arith.constant 0 : index
    %c0_6 = arith.constant 0 : index
    %4 = vector.load %arg1[%c0_5, %c0_6] : memref<128x256xbf16, #tpu.memory_space<vmem>>, vector<128x256xbf16>
    %cst = arith.constant dense<0.000000e+00> : vector<16x256xf32>
    %5 = tpu.matmul %3, %4, %cst {dimension_numbers = #tpu.dot_dimension_numbers<[1], [0], [0], [1], [0, 0, 1, 1], [], []>} : vector<16x128xbf16>, vector<128x256xbf16>, vector<16x256xf32> -> vector<16x256xf32>
    %6 = vector.extract_strided_slice %1 {offsets = [0, 0], sizes = [1, 256], strides = [1, 1]} : vector<6x256xf32> to vector<1x256xf32>
    %7 = vector.broadcast %6 : vector<1x256xf32> to vector<16x256xf32>
    %8 = arith.addf %5, %7 : vector<16x256xf32>
    %9 = vector.extract_strided_slice %1 {offsets = [1, 0], sizes = [1, 256], strides = [1, 1]} : vector<6x256xf32> to vector<1x256xf32>
    %10 = vector.extract_strided_slice %1 {offsets = [2, 0], sizes = [1, 256], strides = [1, 1]} : vector<6x256xf32> to vector<1x256xf32>
    %cst_7 = arith.constant dense<0.000000e+00> : vector<256xf32>
    %11 = vector.multi_reduction <add>, %8, %cst_7 [0] : vector<16x256xf32> to vector<256xf32>
    %12 = vector.shape_cast %11 : vector<256xf32> to vector<1x256xf32>
    %13 = arith.mulf %8, %8 : vector<16x256xf32>
    %cst_8 = arith.constant dense<0.000000e+00> : vector<256xf32>
    %14 = vector.multi_reduction <add>, %13, %cst_8 [0] : vector<16x256xf32> to vector<256xf32>
    %15 = vector.shape_cast %14 : vector<256xf32> to vector<1x256xf32>
    %16 = tpu.concatenate %12, %15 in 0 : vector<1x256xf32>, vector<1x256xf32> -> vector<2x256xf32>
    %cst_9 = arith.constant 0.001953125 : f32
    %17 = vector.broadcast %cst_9 : f32 to vector<2x256xf32>
    %18 = arith.mulf %16, %17 : vector<2x256xf32>
    %19 = arith.truncf %18 : vector<2x256xf32> to vector<2x256xbf16>
    %20 = arith.extf %19 : vector<2x256xbf16> to vector<2x256xf32>
    %21 = arith.subf %18, %20 : vector<2x256xf32>
    %22 = arith.truncf %21 : vector<2x256xf32> to vector<2x256xbf16>
    %23 = tpu.concatenate %19, %22 in 0 : vector<2x256xbf16>, vector<2x256xbf16> -> vector<4x256xbf16>
    %c0_10 = arith.constant 0 : index
    %c0_11 = arith.constant 0 : index
    %24 = vector.load %arg4[%c0_10, %c0_11] : memref<256x256xbf16, #tpu.memory_space<vmem>>, vector<256x256xbf16>
    %cst_12 = arith.constant dense<0.000000e+00> : vector<4x256xf32>
    %25 = tpu.matmul %23, %24, %cst_12 {dimension_numbers = #tpu.dot_dimension_numbers<[1], [0], [0], [1], [0, 0, 1, 1], [], []>} : vector<4x256xbf16>, vector<256x256xbf16>, vector<4x256xf32> -> vector<4x256xf32>
    %26 = vector.extract_strided_slice %25 {offsets = [0, 0], sizes = [2, 256], strides = [1, 1]} : vector<4x256xf32> to vector<2x256xf32>
    %27 = vector.extract_strided_slice %25 {offsets = [2, 0], sizes = [2, 256], strides = [1, 1]} : vector<4x256xf32> to vector<2x256xf32>
    %28 = arith.addf %26, %27 : vector<2x256xf32>
    %29 = vector.extract_strided_slice %28 {offsets = [0, 0], sizes = [1, 256], strides = [1, 1]} : vector<2x256xf32> to vector<1x256xf32>
    %30 = vector.extract_strided_slice %28 {offsets = [1, 0], sizes = [1, 256], strides = [1, 1]} : vector<2x256xf32> to vector<1x256xf32>
    %31 = arith.mulf %29, %29 : vector<1x256xf32>
    %32 = arith.subf %30, %31 : vector<1x256xf32>
    %cst_13 = arith.constant 9.99999974E-6 : f32
    %33 = vector.broadcast %cst_13 : f32 to vector<1x256xf32>
    %34 = arith.addf %32, %33 : vector<1x256xf32>
    %35 = math.rsqrt %34 : vector<1x256xf32>
    %36 = arith.mulf %9, %35 : vector<1x256xf32>
    %37 = vector.broadcast %36 : vector<1x256xf32> to vector<16x256xf32>
    %38 = arith.mulf %8, %37 : vector<16x256xf32>
    %39 = arith.mulf %29, %36 : vector<1x256xf32>
    %40 = arith.subf %10, %39 : vector<1x256xf32>
    %41 = vector.broadcast %40 : vector<1x256xf32> to vector<16x256xf32>
    %42 = arith.addf %38, %41 : vector<16x256xf32>
    %cst_14 = arith.constant 0.000000e+00 : f32
    %43 = vector.broadcast %cst_14 : f32 to vector<16x256xf32>
    %44 = arith.maximumf %42, %43 : vector<16x256xf32>
    %c0_15 = arith.constant 0 : index
    %c0_16 = arith.constant 0 : index
    %45 = vector.load %arg8[%c0_15, %c0_16] : memref<16x2xf32, #tpu.memory_space<vmem>>, vector<16x1xf32>
    %c0_17 = arith.constant 0 : index
    %c1 = arith.constant 1 : index
    %46 = vector.load %arg8[%c0_17, %c1] : memref<16x2xf32, #tpu.memory_space<vmem>>, vector<16x1xf32>
    %c1_i32 = arith.constant 1 : i32
    %47 = tpu.dynamic_rotate %44 by %c1_i32 dim 0 : vector<16x256xf32>, i32 -> vector<16x256xf32>
    %48 = vector.broadcast %45 : vector<16x1xf32> to vector<16x256xf32>
    %49 = arith.mulf %47, %48 : vector<16x256xf32>
    %c15_i32 = arith.constant 15 : i32
    %50 = tpu.dynamic_rotate %44 by %c15_i32 dim 0 : vector<16x256xf32>, i32 -> vector<16x256xf32>
    %51 = vector.broadcast %46 : vector<16x1xf32> to vector<16x256xf32>
    %52 = arith.mulf %50, %51 : vector<16x256xf32>
    %53 = arith.truncf %49 : vector<16x256xf32> to vector<16x256xbf16>
    %54 = arith.truncf %44 : vector<16x256xf32> to vector<16x256xbf16>
    %55 = arith.truncf %52 : vector<16x256xf32> to vector<16x256xbf16>
    %56 = tpu.concatenate %53, %54, %55 in 1 : vector<16x256xbf16>, vector<16x256xbf16>, vector<16x256xbf16> -> vector<16x768xbf16>
    %c0_18 = arith.constant 0 : index
    %c0_19 = arith.constant 0 : index
    %57 = vector.load %arg2[%c0_18, %c0_19] : memref<768x256xbf16, #tpu.memory_space<vmem>>, vector<768x256xbf16>
    %cst_20 = arith.constant dense<0.000000e+00> : vector<16x256xf32>
    %58 = tpu.matmul %56, %57, %cst_20 {dimension_numbers = #tpu.dot_dimension_numbers<[1], [0], [0], [1], [0, 0, 1, 1], [], []>} : vector<16x768xbf16>, vector<768x256xbf16>, vector<16x256xf32> -> vector<16x256xf32>
    %59 = vector.extract_strided_slice %1 {offsets = [3, 0], sizes = [1, 256], strides = [1, 1]} : vector<6x256xf32> to vector<1x256xf32>
    %60 = vector.broadcast %59 : vector<1x256xf32> to vector<16x256xf32>
    %61 = arith.addf %58, %60 : vector<16x256xf32>
    %62 = vector.extract_strided_slice %1 {offsets = [4, 0], sizes = [1, 256], strides = [1, 1]} : vector<6x256xf32> to vector<1x256xf32>
    %63 = vector.extract_strided_slice %1 {offsets = [5, 0], sizes = [1, 256], strides = [1, 1]} : vector<6x256xf32> to vector<1x256xf32>
    %cst_21 = arith.constant dense<0.000000e+00> : vector<256xf32>
    %64 = vector.multi_reduction <add>, %61, %cst_21 [0] : vector<16x256xf32> to vector<256xf32>
    %65 = vector.shape_cast %64 : vector<256xf32> to vector<1x256xf32>
    %66 = arith.mulf %61, %61 : vector<16x256xf32>
    %cst_22 = arith.constant dense<0.000000e+00> : vector<256xf32>
    %67 = vector.multi_reduction <add>, %66, %cst_22 [0] : vector<16x256xf32> to vector<256xf32>
    %68 = vector.shape_cast %67 : vector<256xf32> to vector<1x256xf32>
    %69 = tpu.concatenate %65, %68 in 0 : vector<1x256xf32>, vector<1x256xf32> -> vector<2x256xf32>
    %cst_23 = arith.constant 0.001953125 : f32
    %70 = vector.broadcast %cst_23 : f32 to vector<2x256xf32>
    %71 = arith.mulf %69, %70 : vector<2x256xf32>
    %72 = arith.truncf %71 : vector<2x256xf32> to vector<2x256xbf16>
    %73 = arith.extf %72 : vector<2x256xbf16> to vector<2x256xf32>
    %74 = arith.subf %71, %73 : vector<2x256xf32>
    %75 = arith.truncf %74 : vector<2x256xf32> to vector<2x256xbf16>
    %76 = tpu.concatenate %72, %75 in 0 : vector<2x256xbf16>, vector<2x256xbf16> -> vector<4x256xbf16>
    %c0_24 = arith.constant 0 : index
    %c0_25 = arith.constant 0 : index
    %77 = vector.load %arg4[%c0_24, %c0_25] : memref<256x256xbf16, #tpu.memory_space<vmem>>, vector<256x256xbf16>
    %cst_26 = arith.constant dense<0.000000e+00> : vector<4x256xf32>
    %78 = tpu.matmul %76, %77, %cst_26 {dimension_numbers = #tpu.dot_dimension_numbers<[1], [0], [0], [1], [0, 0, 1, 1], [], []>} : vector<4x256xbf16>, vector<256x256xbf16>, vector<4x256xf32> -> vector<4x256xf32>
    %79 = vector.extract_strided_slice %78 {offsets = [0, 0], sizes = [2, 256], strides = [1, 1]} : vector<4x256xf32> to vector<2x256xf32>
    %80 = vector.extract_strided_slice %78 {offsets = [2, 0], sizes = [2, 256], strides = [1, 1]} : vector<4x256xf32> to vector<2x256xf32>
    %81 = arith.addf %79, %80 : vector<2x256xf32>
    %82 = vector.extract_strided_slice %81 {offsets = [0, 0], sizes = [1, 256], strides = [1, 1]} : vector<2x256xf32> to vector<1x256xf32>
    %83 = vector.extract_strided_slice %81 {offsets = [1, 0], sizes = [1, 256], strides = [1, 1]} : vector<2x256xf32> to vector<1x256xf32>
    %84 = arith.mulf %82, %82 : vector<1x256xf32>
    %85 = arith.subf %83, %84 : vector<1x256xf32>
    %cst_27 = arith.constant 9.99999974E-6 : f32
    %86 = vector.broadcast %cst_27 : f32 to vector<1x256xf32>
    %87 = arith.addf %85, %86 : vector<1x256xf32>
    %88 = math.rsqrt %87 : vector<1x256xf32>
    %89 = arith.mulf %62, %88 : vector<1x256xf32>
    %90 = vector.broadcast %89 : vector<1x256xf32> to vector<16x256xf32>
    %91 = arith.mulf %61, %90 : vector<16x256xf32>
    %92 = arith.mulf %82, %89 : vector<1x256xf32>
    %93 = arith.subf %63, %92 : vector<1x256xf32>
    %94 = vector.broadcast %93 : vector<1x256xf32> to vector<16x256xf32>
    %95 = arith.addf %91, %94 : vector<16x256xf32>
    %cst_28 = arith.constant 0.000000e+00 : f32
    %96 = vector.broadcast %cst_28 : f32 to vector<16x256xf32>
    %97 = arith.maximumf %95, %96 : vector<16x256xf32>
    %98 = arith.truncf %97 : vector<16x256xf32> to vector<16x256xbf16>
    %c0_29 = arith.constant 0 : index
    %c0_30 = arith.constant 0 : index
    %99 = vector.load %arg3[%c0_29, %c0_30] : memref<256x128xbf16, #tpu.memory_space<vmem>>, vector<256x128xbf16>
    %cst_31 = arith.constant dense<0.000000e+00> : vector<16x128xf32>
    %100 = tpu.matmul %98, %99, %cst_31 {dimension_numbers = #tpu.dot_dimension_numbers<[1], [0], [0], [1], [0, 0, 1, 1], [], []>} : vector<16x256xbf16>, vector<256x128xbf16>, vector<16x128xf32> -> vector<16x128xf32>
    %101 = vector.extract_strided_slice %2 {offsets = [0, 0], sizes = [1, 128], strides = [1, 1]} : vector<3x128xf32> to vector<1x128xf32>
    %102 = vector.broadcast %101 : vector<1x128xf32> to vector<16x128xf32>
    %103 = arith.addf %100, %102 : vector<16x128xf32>
    %104 = vector.extract_strided_slice %2 {offsets = [1, 0], sizes = [1, 128], strides = [1, 1]} : vector<3x128xf32> to vector<1x128xf32>
    %105 = vector.extract_strided_slice %2 {offsets = [2, 0], sizes = [1, 128], strides = [1, 1]} : vector<3x128xf32> to vector<1x128xf32>
    %cst_32 = arith.constant dense<0.000000e+00> : vector<128xf32>
    %106 = vector.multi_reduction <add>, %103, %cst_32 [0] : vector<16x128xf32> to vector<128xf32>
    %107 = vector.shape_cast %106 : vector<128xf32> to vector<1x128xf32>
    %108 = arith.mulf %103, %103 : vector<16x128xf32>
    %cst_33 = arith.constant dense<0.000000e+00> : vector<128xf32>
    %109 = vector.multi_reduction <add>, %108, %cst_33 [0] : vector<16x128xf32> to vector<128xf32>
    %110 = vector.shape_cast %109 : vector<128xf32> to vector<1x128xf32>
    %111 = tpu.concatenate %107, %110 in 0 : vector<1x128xf32>, vector<1x128xf32> -> vector<2x128xf32>
    %cst_34 = arith.constant 0.001953125 : f32
    %112 = vector.broadcast %cst_34 : f32 to vector<2x128xf32>
    %113 = arith.mulf %111, %112 : vector<2x128xf32>
    %114 = arith.truncf %113 : vector<2x128xf32> to vector<2x128xbf16>
    %115 = arith.extf %114 : vector<2x128xbf16> to vector<2x128xf32>
    %116 = arith.subf %113, %115 : vector<2x128xf32>
    %117 = arith.truncf %116 : vector<2x128xf32> to vector<2x128xbf16>
    %118 = tpu.concatenate %114, %117 in 0 : vector<2x128xbf16>, vector<2x128xbf16> -> vector<4x128xbf16>
    %c0_35 = arith.constant 0 : index
    %c0_36 = arith.constant 0 : index
    %119 = vector.load %arg5[%c0_35, %c0_36] : memref<128x128xbf16, #tpu.memory_space<vmem>>, vector<128x128xbf16>
    %cst_37 = arith.constant dense<0.000000e+00> : vector<4x128xf32>
    %120 = tpu.matmul %118, %119, %cst_37 {dimension_numbers = #tpu.dot_dimension_numbers<[1], [0], [0], [1], [0, 0, 1, 1], [], []>} : vector<4x128xbf16>, vector<128x128xbf16>, vector<4x128xf32> -> vector<4x128xf32>
    %121 = vector.extract_strided_slice %120 {offsets = [0, 0], sizes = [2, 128], strides = [1, 1]} : vector<4x128xf32> to vector<2x128xf32>
    %122 = vector.extract_strided_slice %120 {offsets = [2, 0], sizes = [2, 128], strides = [1, 1]} : vector<4x128xf32> to vector<2x128xf32>
    %123 = arith.addf %121, %122 : vector<2x128xf32>
    %124 = vector.extract_strided_slice %123 {offsets = [0, 0], sizes = [1, 128], strides = [1, 1]} : vector<2x128xf32> to vector<1x128xf32>
    %125 = vector.extract_strided_slice %123 {offsets = [1, 0], sizes = [1, 128], strides = [1, 1]} : vector<2x128xf32> to vector<1x128xf32>
    %126 = arith.mulf %124, %124 : vector<1x128xf32>
    %127 = arith.subf %125, %126 : vector<1x128xf32>
    %cst_38 = arith.constant 9.99999974E-6 : f32
    %128 = vector.broadcast %cst_38 : f32 to vector<1x128xf32>
    %129 = arith.addf %127, %128 : vector<1x128xf32>
    %130 = math.rsqrt %129 : vector<1x128xf32>
    %131 = arith.mulf %104, %130 : vector<1x128xf32>
    %132 = vector.broadcast %131 : vector<1x128xf32> to vector<16x128xf32>
    %133 = arith.mulf %103, %132 : vector<16x128xf32>
    %134 = arith.mulf %124, %131 : vector<1x128xf32>
    %135 = arith.subf %105, %134 : vector<1x128xf32>
    %136 = vector.broadcast %135 : vector<1x128xf32> to vector<16x128xf32>
    %137 = arith.addf %133, %136 : vector<16x128xf32>
    %138 = arith.addf %137, %0 : vector<16x128xf32>
    %c0_39 = arith.constant 0 : index
    %c0_40 = arith.constant 0 : index
    %139 = vector.load %arg9[%c0_39, %c0_40] : memref<16x128xf32, #tpu.memory_space<vmem>>, vector<16x128xf32>
    tpu.vector_store %arg9[%c0_39, %c0_40], %138 {strides = array<i32>} : memref<16x128xf32, #tpu.memory_space<vmem>>, vector<16x128xf32>,
    return
  }
}

</mosaic_0001>

<bundles_post_ra>
// kernel: apply.1
= control target key start
LH: loop header
LB: loop body
LE: loop exit
PB: predicated region body
PF: predicated region fallthrough
CT: control target
= control target key end

     0   :  { %14 = vsyncpa [#allocation3], 0  ;;  %s3200_s0 = inlined_call_operand.vmem [shape: f32[16,128], index: 0, kind: input, shape index: {}]   ;;  %s3201_s1 = inlined_call_operand.hbm [shape: bf16[128,256], index: 1, kind: input, shape index: {}]   ;;  %s3202_s2 = inlined_call_operand.vmem [shape: bf16[768,256], index: 2, kind: input, shape index: {}]   ;;  %s3203_s3 = inlined_call_operand.vmem [shape: bf16[256,128], index: 3, kind: input, shape index: {}]   ;;  %s3204_s4 = inlined_call_operand.vmem [shape: bf16[256,256], index: 4, kind: input, shape index: {}]   ;;  %s3205_s5 = inlined_call_operand.hbm [shape: bf16[128,128], index: 5, kind: input, shape index: {}]   ;;  %s3206_s6 = inlined_call_operand.hbm [shape: f32[6,256], index: 6, kind: input, shape index: {}]   ;;  %s3207_s7 = inlined_call_operand.vmem [shape: f32[3,128], index: 7, kind: input, shape index: {}]   ;;  %s3208_s8 = inlined_call_operand.vmem [shape: f32[16,2], index: 8, kind: input, shape index: {}]   ;;  %s3209_s9 = inlined_call_operand.vmem [shape: f32[16,128], index: 9, kind: output, shape index: {}]  }
   0x1   :  { %15 = vsyncpa [#allocation5], 0  ;;  %s2430_s30 = smov [#allocation4]  }
   0x2   :  { %s41_s10 = sshll.u32 %s2430_s30, 4  ;;  %s42_s10 = int_to_ptr.vmem [resolvable:$true] %s41_s10 }
   0x3   :  { %s2374_s11 = scalar_lea.vmem %s42_s10, 1024  ;;  %p2379_p1 = scmp.lt.s32.totalorder %s42_s10, %s42_s10 }
   0x4   :  { %p2375_p0 = scmp.ne.s32.totalorder %s42_s10, %s2374_s11  ;;  %p2380_p2 = scmp.lt.s32.totalorder %s2374_s11, %s2374_s11 }
   0x6   :  { %p2381_p3 = por %p2380_p2, %p2379_p1 }
   0x8   :  { %p2382_p4 = pnand %p2381_p3, %p2375_p0 }
   0xa   :  { %2385 = shalt.err (!%p2382_p4)
}
   0xb   :  { %s2431_s12 = smov 64   ;;  %s2432_s13 = smov 4  }
   0xc   :  { %47 = dma.hbm_to_vmem [thread:$0]  %s3205_s5, 1024, %s42_s10, [#allocation5], %s2431_s12, %s2431_s12, %s2432_s13  }
   0xd   :  { %s2433_s16 = smov [#allocation2]  }
   0xe   :  { %s23_s17 = sshll.u32 %s2433_s16, 4  ;;  %s24_s17 = int_to_ptr.vmem [resolvable:$true] %s23_s17 }
   0xf   :  { %s2394_s18 = scalar_lea.vmem %s24_s17, 2048  ;;  %p2399_p6 = scmp.lt.s32.totalorder %s24_s17, %s24_s17 }
  0x10   :  { %p2395_p5 = scmp.ne.s32.totalorder %s24_s17, %s2394_s18  ;;  %p2400_p7 = scmp.lt.s32.totalorder %s2394_s18, %s2394_s18 }
  0x12   :  { %p2401_p8 = por %p2400_p7, %p2399_p6 }
  0x14   :  { %p2402_p9 = pnand %p2401_p8, %p2395_p5 }
  0x16   :  { %2405 = shalt.err (!%p2402_p9)
}
  0x17   :  { %s2434_s19 = smov 128   ;;  %s2435_s20 = smov 8  }
  0x18   :  { %29 = dma.hbm_to_vmem [thread:$0]  %s3201_s1, 2048, %s24_s17, [#allocation3], %s2434_s19, %s2434_s19, %s2435_s20  }
  0x19   :  { %s2436_s23 = smov [#allocation6]  }
  0x1a   :  { %s54_s24 = sshll.u32 %s2436_s23, 4  ;;  %s55_s24 = int_to_ptr.vmem [resolvable:$true] %s54_s24 }
  0x1b   :  { %s2414_s5 = scalar_lea.vmem %s55_s24, 256  ;;  %p2419_p11 = scmp.lt.s32.totalorder %s55_s24, %s55_s24 }
  0x1c   :  { %p2415_p10 = scmp.ne.s32.totalorder %s55_s24, %s2414_s5  ;;  %p2420_p12 = scmp.lt.s32.totalorder %s2414_s5, %s2414_s5 }
  0x1e   :  { %p2421_p13 = por %p2420_p12, %p2419_p11 }
  0x20   :  { %p2422_p0 = pnand %p2421_p13, %p2415_p10 }
  0x22   :  { %2425 = shalt.err (!%p2422_p0)
}
  0x23   :  { %57 = dma.hbm_to_vmem [thread:$0]  %s3206_s6, 256, %s55_s24, [#allocation5]  }
  0x24   :  { %2426 = dma.done.wait [#allocation3], 2048  }
  0x25   :  { %2427 = vsyncadd [#allocation3], 4294965248 }
  0x26   :  { %2428 = dma.done.wait [#allocation5], 1280  }
  0x27   :  { %2429 = vsyncadd [#allocation5], 4294966016  ;;  %v2437_v0 = vmov 0   ;;  %v2103_v1 = vld [vmem:[#allocation2 + $0x74] ss:$8 sps:$4 sm:$0xff]   ;;  %v72_v26 = vld [vmem:[%s3200_s0] sm:$0xff]  ;;  %v94_v62 = vlaneseq }
  0x28   :  { %214 = vmatprep.mubr.bf16.mxu0 %v2437_v0  ;;  %2100 = vset.pattern.permute.xlu0 %v2437_v0  ;;  %v2105_v2 = vld [vmem:[#allocation2 + $0x70] ss:$8 sps:$4 sm:$0xff]   ;;  %v2106_v3 = vld [vmem:[#allocation2 + $0x64] ss:$8 sps:$4 sm:$0xff]   ;;  %v2108_v4 = vld [vmem:[#allocation2 + $0x60] ss:$8 sps:$4 sm:$0xff]  }
  0x29   :  { %182 = vmatprep.subr.bf16.mxu0 %v2103_v1  ;;  %v2109_v5 = vld [vmem:[#allocation2 + $0x54] ss:$8 sps:$4 sm:$0xff]   ;;  %v2111_v6 = vld [vmem:[#allocation2 + $0x50] ss:$8 sps:$4 sm:$0xff]   ;;  %v2112_v7 = vld [vmem:[#allocation2 + $0x44] ss:$8 sps:$4 sm:$0xff]  }
  0x2a   :  { %183 = vmatpush1.bf16.msra.mxu0 %v2105_v2  ;;  %v2114_v8 = vld [vmem:[#allocation2 + $0x40] ss:$8 sps:$4 sm:$0xff]   ;;  %v2115_v9 = vld [vmem:[#allocation2 + $0x34] ss:$8 sps:$4 sm:$0xff]   ;;  %v2129_v11 = vld [vmem:[%s3204_s4 + $0x70] ss:$8 sps:$4 sm:$0xff]  }
  0x2b   :  { %184 = vmatprep.subr.bf16.mxu0 %v2106_v3  ;;  %v2503_v10 = vld [vmem:[%s3204_s4 + $0x74] ss:$8 sps:$4 sm:$0xff]   ;;  %v2130_v12 = vld [vmem:[%s3204_s4 + $0x64] ss:$8 sps:$4 sm:$0xff]   ;;  %v2117_v13 = vld [vmem:[#allocation2 + $0x30] ss:$8 sps:$4 sm:$0xff]  }
  0x2c   :  { %474 = vmatprep.subr.bf16.mxu1 %v2503_v10  ;;  %v2132_v14 = vld [vmem:[%s3204_s4 + $0x60] ss:$8 sps:$4 sm:$0xff]   ;;  %v2118_v15 = vld [vmem:[#allocation2 + $0x24] ss:$8 sps:$4 sm:$0xff]   ;;  %v2133_v16 = vld [vmem:[%s3204_s4 + $0x54] ss:$8 sps:$4 sm:$0xff]  }
  0x2d   :  { %475 = vmatpush1.bf16.msra.mxu1 %v2129_v11  ;;  %v2120_v17 = vld [vmem:[#allocation2 + $0x20] ss:$8 sps:$4 sm:$0xff]   ;;  %v2121_v18 = vld [vmem:[#allocation2 + $0x14] ss:$8 sps:$4 sm:$0xff]   ;;  %v2135_v19 = vld [vmem:[%s3204_s4 + $0x50] ss:$8 sps:$4 sm:$0xff]  }
  0x2e   :  { %185 = vmatpush1.bf16.msra.mxu0 %v2108_v4  ;;  %476 = vmatprep.subr.bf16.mxu1 %v2130_v12  ;;  %v2136_v20 = vld [vmem:[%s3204_s4 + $0x44] ss:$8 sps:$4 sm:$0xff]   ;;  %v2123_v21 = vld [vmem:[#allocation2 + $0x10] ss:$8 sps:$4 sm:$0xff]   ;;  %v2138_v22 = vld [vmem:[%s3204_s4 + $0x40] ss:$8 sps:$4 sm:$0xff]  }
  0x2f   :  { %186 = vmatprep.subr.bf16.mxu0 %v2109_v5  ;;  %v2124_v23 = vld [vmem:[#allocation2 + $0x4] ss:$8 sps:$4 sm:$0xff]   ;;  %v2139_v24 = vld [vmem:[%s3204_s4 + $0x34] ss:$8 sps:$4 sm:$0xff]   ;;  %v2126_v25 = vld [vmem:[#allocation2] ss:$8 sps:$4 sm:$0xff]  }
  0x30   :  { %v73_v27 = vld [vmem:[%s3200_s0 + $0x8] sm:$0xff]  ;;  %v2141_v28 = vld [vmem:[%s3204_s4 + $0x30] ss:$8 sps:$4 sm:$0xff]   ;;  %v2548_v32 = vld [vmem:[%s3204_s4 + $0x14] ss:$8 sps:$4 sm:$0xff]   ;;  %v2438_v53 = vmov 1  }
  0x31   :  { %477 = vmatpush1.bf16.msra.mxu1 %v2132_v14  ;;  %v2142_v29 = vld [vmem:[%s3204_s4 + $0x24] ss:$8 sps:$4 sm:$0xff]   ;;  %v2144_v30 = vld [vmem:[%s3204_s4 + $0x20] ss:$8 sps:$4 sm:$0xff]   ;;  %v77_v31 = vpack.c.bf16 %v73_v27, %v72_v26  ;;  %v2553_v33 = vld [vmem:[%s3204_s4 + $0x10] ss:$8 sps:$4 sm:$0xff]   ;;  %2101 = vset.pattern.permute.xlu1 %v2438_v53 }
  0x32   :  { %187 = vmatpush1.bf16.msra.mxu0 %v2111_v6  ;;  %478 = vmatprep.subr.bf16.mxu1 %v2133_v16  ;;  %v2560_v34 = vld [vmem:[%s3204_s4 + $0x4] ss:$8 sps:$4 sm:$0xff]   ;;  %v2565_v35 = vld [vmem:[%s3204_s4] ss:$8 sps:$4 sm:$0xff]   ;;  %v2572_v36 = vld [vmem:[%s3204_s4 + $0xf4] ss:$8 sps:$4 sm:$0xff]  }
  0x33   :  { %188 = vmatprep.subr.bf16.mxu0 %v2112_v7  ;;  %v2577_v37 = vld [vmem:[%s3204_s4 + $0xf0] ss:$8 sps:$4 sm:$0xff]   ;;  %v2584_v38 = vld [vmem:[%s3204_s4 + $0xe4] ss:$8 sps:$4 sm:$0xff]   ;;  %v2589_v39 = vld [vmem:[%s3204_s4 + $0xe0] ss:$8 sps:$4 sm:$0xff]  }
  0x34   :  { %v2596_v40 = vld [vmem:[%s3204_s4 + $0xd4] ss:$8 sps:$4 sm:$0xff]   ;;  %v2601_v41 = vld [vmem:[%s3204_s4 + $0xd0] ss:$8 sps:$4 sm:$0xff]   ;;  %v2608_v42 = vld [vmem:[%s3204_s4 + $0xc4] ss:$8 sps:$4 sm:$0xff]  }
  0x35   :  { %479 = vmatpush1.bf16.msra.mxu1 %v2135_v19  ;;  %v2613_v43 = vld [vmem:[%s3204_s4 + $0xc0] ss:$8 sps:$4 sm:$0xff]   ;;  %v2618_v44 = vld [vmem:[%s3204_s4 + $0xb4] ss:$8 sps:$4 sm:$0xff]   ;;  %v2625_v45 = vld [vmem:[%s3204_s4 + $0xb0] ss:$8 sps:$4 sm:$0xff]  }
  0x36   :  { %189 = vmatpush1.bf16.msra.mxu0 %v2114_v8  ;;  %480 = vmatprep.subr.bf16.mxu1 %v2136_v20  ;;  %v2631_v46 = vld [vmem:[%s3204_s4 + $0xa4] ss:$8 sps:$4 sm:$0xff]   ;;  %v2637_v47 = vld [vmem:[%s3204_s4 + $0xa0] ss:$8 sps:$4 sm:$0xff]   ;;  %v2643_v48 = vld [vmem:[%s3204_s4 + $0x94] ss:$8 sps:$4 sm:$0xff]  }
  0x37   :  { %190 = vmatprep.subr.bf16.mxu0 %v2115_v9  ;;  %v2649_v49 = vld [vmem:[%s3204_s4 + $0x90] ss:$8 sps:$4 sm:$0xff]   ;;  %v2655_v50 = vld [vmem:[%s3204_s4 + $0x84] ss:$8 sps:$4 sm:$0xff]   ;;  %v2661_v51 = vld [vmem:[%s3204_s4 + $0x80] ss:$8 sps:$4 sm:$0xff]  }
  0x38   :  { %v583_v52 = vld [vmem:[%s3208_s8] sm:$0xff]  ;;  %v2177_v54 = vld [vmem:[%s3202_s2 + $0x174] ss:$8 sps:$4 sm:$0xff]   ;;  %v2178_v55 = vld [vmem:[%s3202_s2 + $0x70] ss:$8 sps:$4 sm:$0xff]   ;;  %v2692_v63 = vshrl.u32 %v94_v62, 7 }
  0x39   :  { %481 = vmatpush1.bf16.msra.mxu1 %v2138_v22  ;;  %598 = vperm.xlu0 %2100, %v583_v52   ;;  %v2180_v56 = vld [vmem:[%s3202_s2 + $0x74] ss:$8 sps:$4 sm:$0xff]   ;;  %v584_v57 = vld [vmem:[%s3208_s8 + $0x8] sm:$0xff]  ;;  %v2190_v60 = vld [vmem:[%s3202_s2 + $0x50] ss:$8 sps:$4 sm:$0xff]   ;;  %vm257_vm0 = vcmask 1040384  }
  0x3a   :  { %191 = vmatpush1.bf16.msra.mxu0 %v2117_v13  ;;  %482 = vmatprep.subr.bf16.mxu1 %v2139_v24  ;;  %v2184_v58 = vld [vmem:[%s3202_s2 + $0x60] ss:$8 sps:$4 sm:$0xff]   ;;  %v2186_v59 = vld [vmem:[%s3202_s2 + $0x64] ss:$8 sps:$4 sm:$0xff]   ;;  %v2192_v61 = vld [vmem:[%s3202_s2 + $0x54] ss:$8 sps:$4 sm:$0xff]  }
  0x3b   :  { %192 = vmatprep.subr.bf16.mxu0 %v2118_v15  ;;  %620 = vperm.xlu1 %2101, %v583_v52   ;;  %v2695_v0 = vsub.s32 0, %v2692_v63  ;;  %v2697_v1 = vld [vmem:[#allocation6] sm:$0x3f]  ;;  %v2699_v2 = vld [vmem:[#allocation6 + $0x8] sm:$0x3f]  ;;  %vm591_vm1 = vcmp.lt.s32.totalorder %v2692_v63, 1 }
  0x3c   :  { %vm614_vm2 = vcmp.lt.s32.totalorder %v2692_v63, 7  ;;  %vm2440_vm3 = vmmov 0  }
  0x3d   :  { %483 = vmatpush1.bf16.msra.mxu1 %v2141_v28  ;;  %603 = vperm.xlu0 %2100, %v584_v57   ;;  %v97_v3 = vrot.slane %v2697_v1, %v2695_v0  ;;  %v101_v5 = vrot.slane %v2699_v2, %v2695_v0 }
  0x3e   :  { %193 = vmatpush1.bf16.msra.mxu0 %v2120_v17  ;;  %484 = vmatprep.subr.bf16.mxu1 %v2142_v29 }
  0x3f   :  { %194 = vmatprep.subr.bf16.mxu0 %v2121_v18  ;;  %624 = vperm.xlu1 %2101, %v584_v57  }
  0x41   :  { %485 = vmatpush1.bf16.msra.mxu1 %v2144_v30  ;;  %2102 = vset.pattern.permute.xlu0 %v2438_v53 }
  0x42   :  { %195 = vmatpush1.bf16.msra.mxu0 %v2123_v21  ;;  %486 = vmatprep.subr.bf16.mxu1 %v2548_v32 }
  0x43   :  { %196 = vmatprep.subr.bf16.mxu0 %v2124_v23 }
  0x45   :  { %487 = vmatpush1.bf16.msra.mxu1 %v2553_v33 }
  0x46   :  { %197 = vmatpush1.bf16.msra.mxu0 %v2126_v25  ;;  %488 = vmatprep.subr.bf16.mxu1 %v2560_v34 }
  0x47   :  { %1221 = vmatprep.subr.bf16.mxu0 %v2180_v56 }
  0x49   :  { %215 = vmatmul.mubr.bf16.vlgmr.msra.gmra.mxu0 %v77_v31  ;;  %489 = vmatpush1.bf16.msra.mxu1 %v2565_v35 }
  0x4a   :  { %490 = vmatprep.subr.bf16.mxu1 %v2572_v36  ;;  %1222 = vmatpush1.bf16.msra.mxu0 %v2178_v55 }
  0x4b   :  { %1223 = vmatprep.subr.bf16.mxu0 %v2186_v59 }
  0x4d   :  { %491 = vmatpush2.bf16.msra.mxu1 %v2577_v37 }
  0x4e   :  { %492 = vmatprep.subr.bf16.mxu1 %v2584_v38  ;;  %1224 = vmatpush1.bf16.msra.mxu0 %v2184_v58 }
  0x4f   :  { %1225 = vmatprep.subr.bf16.mxu0 %v2192_v61 }
  0x51   :  { %493 = vmatpush2.bf16.msra.mxu1 %v2589_v39 }
  0x52   :  { %494 = vmatprep.subr.bf16.mxu1 %v2596_v40  ;;  %1226 = vmatpush1.bf16.msra.mxu0 %v2190_v60 }
  0x55   :  { %495 = vmatpush2.bf16.msra.mxu1 %v2601_v41 }
  0x56   :  { %496 = vmatprep.subr.bf16.mxu1 %v2608_v42 }
  0x59   :  { %497 = vmatpush2.bf16.msra.mxu1 %v2613_v43 }
  0x5a   :  { %498 = vmatprep.subr.bf16.mxu1 %v2618_v44 }
  0x5d   :  { %499 = vmatpush2.bf16.msra.mxu1 %v2625_v45 }
  0x5e   :  { %500 = vmatprep.subr.bf16.mxu1 %v2631_v46 }
  0x61   :  { %501 = vmatpush2.bf16.msra.mxu1 %v2637_v47 }
  0x62   :  { %502 = vmatprep.subr.bf16.mxu1 %v2643_v48 }
  0x65   :  { %503 = vmatpush2.bf16.msra.mxu1 %v2649_v49 }
  0x66   :  { %504 = vmatprep.subr.bf16.mxu1 %v2655_v50 }
  0x69   :  { %505 = vmatpush2.bf16.msra.mxu1 %v2661_v51 }
  0x6a   :  { %1264 = vmatprep.subr.bf16.mxu1 %v2177_v54 }
 0x109   :  { %v216_v4 = vpop.f32.mrf.mxu0 }
 0x10a   :  { %v2705_v7 = vadd.f32 %v216_v4, %v97_v3 }
 0x10b   :  { %v218_v6 = vpop.f32.mrf.mxu0 }
 0x10c   :  { %v2707_v8 = vadd.f32 %v218_v6, %v101_v5  ;;  %v239_v13 = vmul.f32 %v2705_v7, %v2705_v7 }
 0x10d   :  { %v220_v9 = vpop.f32.mrf.mxu0 }
 0x10e   :  { %v2709_v11 = vadd.f32 %v220_v9, %v97_v3  ;;  %v240_v17 = vmul.f32 %v2707_v8, %v2707_v8 }
 0x10f   :  { %v222_v12 = vpop.f32.mrf.mxu0 }
 0x110   :  { %v225_v14 = vadd.f32 %v2709_v11, %v2705_v7  ;;  %v241_v15 = vmul.f32 %v2709_v11, %v2709_v11  ;;  %v2717_v16 = vadd.f32 %v222_v12, %v101_v5 }
 0x112   :  { %v226_v18 = vrot.slane %v225_v14, 4  ;;  %v243_v19 = vadd.f32 %v241_v15, %v239_v13  ;;  %v232_v20 = vadd.f32 %v2717_v16, %v2707_v8  ;;  %v242_v21 = vmul.f32 %v2717_v16, %v2717_v16 }
 0x114   :  { %v227_v22 = vadd.f32 %v226_v18, %v225_v14  ;;  %v244_v23 = vrot.slane %v243_v19, 4  ;;  %v233_v24 = vrot.slane %v232_v20, 4  ;;  %v250_v25 = vadd.f32 %v242_v21, %v240_v17 }
 0x116   :  { %v228_v26 = vrot.slane %v227_v22, 2  ;;  %v245_v27 = vadd.f32 %v244_v23, %v243_v19  ;;  %v234_v28 = vadd.f32 %v233_v24, %v232_v20  ;;  %v251_v29 = vrot.slane %v250_v25, 4 }
 0x118   :  { %v229_v30 = vadd.f32 %v228_v26, %v227_v22  ;;  %v246_v31 = vrot.slane %v245_v27, 2  ;;  %v235_v52 = vrot.slane %v234_v28, 2  ;;  %v252_v53 = vadd.f32 %v251_v29, %v250_v25  ;;  %v2175_v25 = vld [vmem:[%s3202_s2 + $0x170] ss:$8 sps:$4 sm:$0xff]   ;;  %v2181_v29 = vld [vmem:[%s3202_s2 + $0x160] ss:$8 sps:$4 sm:$0xff]  }
 0x11a   :  { %v230_v54 = vrot.slane %v229_v30, 1  ;;  %v247_v55 = vadd.f32 %v246_v31, %v245_v27  ;;  %v236_v56 = vadd.f32 %v235_v52, %v234_v28  ;;  %v253_v57 = vrot.slane %v252_v53, 2  ;;  %v2183_v27 = vld [vmem:[%s3202_s2 + $0x164] ss:$8 sps:$4 sm:$0xff]   ;;  %v2187_v31 = vld [vmem:[%s3202_s2 + $0x150] ss:$8 sps:$4 sm:$0xff]  }
 0x11b   :  { %v2195_v52 = vld [vmem:[%s3202_s2 + $0x144] ss:$8 sps:$4 sm:$0xff]  }
 0x11c   :  { %v248_v58 = vrot.slane %v247_v55, 1  ;;  %v237_v59 = vrot.slane %v236_v56, 1  ;;  %v254_v60 = vadd.f32 %v253_v57, %v252_v53  ;;  %v231_v61 = vadd.f32 %v230_v54, %v229_v30  ;;  %v2189_v30 = vld [vmem:[%s3202_s2 + $0x154] ss:$8 sps:$4 sm:$0xff]   ;;  %v2193_v53 = vld [vmem:[%s3202_s2 + $0x140] ss:$8 sps:$4 sm:$0xff]  }
 0x11d   :  { %v2198_v54 = vld [vmem:[%s3202_s2 + $0x44] ss:$8 sps:$4 sm:$0xff]   ;;  %v2199_v57 = vld [vmem:[%s3202_s2 + $0x130] ss:$8 sps:$4 sm:$0xff]  }
 0x11e   :  { %v255_v62 = vrot.slane %v254_v60, 1  ;;  %v249_v3 = vadd.f32 %v248_v58, %v247_v55  ;;  %v238_v4 = vadd.f32 %v237_v59, %v236_v56  ;;  %v2201_v55 = vld [vmem:[%s3202_s2 + $0x134] ss:$8 sps:$4 sm:$0xff]   ;;  %v2196_v56 = vld [vmem:[%s3202_s2 + $0x40] ss:$8 sps:$4 sm:$0xff]   ;;  %1227 = vmatprep.subr.bf16.mxu0 %v2198_v54 }
 0x11f   :  { %1228 = vmatpush1.bf16.msra.mxu0 %v2196_v56  ;;  %v2204_v58 = vld [vmem:[%s3202_s2 + $0x34] ss:$8 sps:$4 sm:$0xff]   ;;  %v2207_v59 = vld [vmem:[%s3202_s2 + $0x124] ss:$8 sps:$4 sm:$0xff]   ;;  %v2247_v54 = vld [vmem:[%s3202_s2 + $0x1b0] ss:$8 sps:$4 sm:$0xff]  }
 0x120   :  { %v256_v5 = vadd.f32 %v255_v62, %v254_v60  ;;  %v258_v6 = vsel %vm257_vm0, %v231_v61, %v249_v3  ;;  %v2202_v60 = vld [vmem:[%s3202_s2 + $0x30] ss:$8 sps:$4 sm:$0xff]   ;;  %v2205_v61 = vld [vmem:[%s3202_s2 + $0x120] ss:$8 sps:$4 sm:$0xff]   ;;  %1229 = vmatprep.subr.bf16.mxu0 %v2204_v58  ;;  %v2210_v62 = vld [vmem:[%s3202_s2 + $0x24] ss:$8 sps:$4 sm:$0xff]  }
 0x121   :  { %v260_v9 = vmul.f32 0.001953125, %v258_v6  ;;  %v2213_v3 = vld [vmem:[%s3202_s2 + $0x114] ss:$8 sps:$4 sm:$0xff]   ;;  %v2255_v56 = vld [vmem:[%s3202_s2 + $0x1a4] ss:$8 sps:$4 sm:$0xff]  }
 0x122   :  { %v259_v12 = vsel %vm257_vm0, %v238_v4, %v256_v5  ;;  %v2208_v4 = vld [vmem:[%s3202_s2 + $0x20] ss:$8 sps:$4 sm:$0xff]   ;;  %v2211_v5 = vld [vmem:[%s3202_s2 + $0x110] ss:$8 sps:$4 sm:$0xff]   ;;  %v2216_v6 = vld [vmem:[%s3202_s2 + $0x14] ss:$8 sps:$4 sm:$0xff]  }
 0x123   :  { %v261_v13 = vmul.f32 0.001953125, %v259_v12  ;;  %v262_v14 = vpack.c.bf16 %v260_v9, %v260_v9  ;;  %1230 = vmatpush1.bf16.msra.mxu0 %v2202_v60  ;;  %v2214_v12 = vld [vmem:[%s3202_s2 + $0x10] ss:$8 sps:$4 sm:$0xff]   ;;  %v2253_v58 = vld [vmem:[%s3202_s2 + $0x1a0] ss:$8 sps:$4 sm:$0xff]  }
 0x124   :  { %1231 = vmatprep.subr.bf16.mxu0 %v2210_v62  ;;  %v2261_v60 = vld [vmem:[%s3202_s2 + $0x194] ss:$8 sps:$4 sm:$0xff]   ;;  %v2259_v62 = vld [vmem:[%s3202_s2 + $0x190] ss:$8 sps:$4 sm:$0xff]  }
 0x125   :  { %v263_v15 = vpack.c.bf16 %v261_v13, %v261_v13  ;;  %v264_v17 = vunpack.c.l.bf16 %v262_v14 }
 0x127   :  { %v265_v18 = vunpack.c.l.bf16 %v263_v15  ;;  %v266_v19 = vsub.f32 %v260_v9, %v264_v17  ;;  %1232 = vmatpush1.bf16.msra.mxu0 %v2208_v4  ;;  %v2219_v9 = vld [vmem:[%s3202_s2 + $0x104] ss:$8 sps:$4 sm:$0xff]   ;;  %v2220_v17 = vld [vmem:[%s3202_s2] ss:$8 sps:$4 sm:$0xff]  }
 0x128   :  { %1233 = vmatprep.subr.bf16.mxu0 %v2216_v6  ;;  %v2267_v4 = vld [vmem:[%s3202_s2 + $0x184] ss:$8 sps:$4 sm:$0xff]   ;;  %v2265_v6 = vld [vmem:[%s3202_s2 + $0x180] ss:$8 sps:$4 sm:$0xff]  }
 0x129   :  { %v267_v20 = vsub.f32 %v261_v13, %v265_v18  ;;  %v268_v21 = vpack.c.bf16 %v266_v19, %v266_v19  ;;  %v2217_v13 = vld [vmem:[%s3202_s2 + $0x100] ss:$8 sps:$4 sm:$0xff]   ;;  %v2223_v18 = vld [vmem:[%s3202_s2 + $0x1f0] ss:$8 sps:$4 sm:$0xff]   ;;  %v2228_v19 = vld [vmem:[%s3202_s2 + $0xf4] ss:$8 sps:$4 sm:$0xff]  }
 0x12b   :  { %v269_v22 = vpack.c.bf16 %v267_v20, %v267_v20  ;;  %v272_v23 = vrot.slane %v268_v21, 7  ;;  %1234 = vmatpush1.bf16.msra.mxu0 %v2214_v12  ;;  %v2231_v20 = vld [vmem:[%s3202_s2 + $0x1e4] ss:$8 sps:$4 sm:$0xff]   ;;  %v2226_v21 = vld [vmem:[%s3202_s2 + $0xf0] ss:$8 sps:$4 sm:$0xff]  }
 0x12c   :  { %v2268_v12 = vld [vmem:[%s3202_s2 + $0x80] ss:$8 sps:$4 sm:$0xff]  }
 0x12d   :  { %v273_v24 = vrot.slane %v269_v22, 7  ;;  %v276_v28 = vsel %vm257_vm0, %v262_v14, %v272_v23  ;;  %v2222_v14 = vld [vmem:[%s3202_s2 + $0x4] ss:$8 sps:$4 sm:$0xff]   ;;  %v2229_v22 = vld [vmem:[%s3202_s2 + $0x1e0] ss:$8 sps:$4 sm:$0xff]  }
 0x12e   :  { %1235 = vmatprep.subr.bf16.mxu0 %v2222_v14  ;;  %v2234_v23 = vld [vmem:[%s3202_s2 + $0xe4] ss:$8 sps:$4 sm:$0xff]  }
 0x12f   :  { %v280_v26 = vsel %vm257_vm0, %v263_v15, %v273_v24  ;;  %v2225_v15 = vld [vmem:[%s3202_s2 + $0x1f4] ss:$8 sps:$4 sm:$0xff]   ;;  %1236 = vmatpush1.bf16.msra.mxu0 %v2220_v17 }
 0x130   :  { %506 = vmatprep.mubr.bf16.mxu1 %v280_v26  ;;  %1237 = vmatprep.subr.bf16.mxu0 %v2228_v19  ;;  %v2237_v24 = vld [vmem:[%s3202_s2 + $0x1d4] ss:$8 sps:$4 sm:$0xff]   ;;  %v2235_v26 = vld [vmem:[%s3202_s2 + $0x1d0] ss:$8 sps:$4 sm:$0xff]  }
 0x131   :  { %507 = vmatmul.mubr.bf16.vlgmr.msra.gmra.mxu1 %v276_v28  ;;  %v2243_v28 = vld [vmem:[%s3202_s2 + $0x1c4] ss:$8 sps:$4 sm:$0xff]  }
 0x132   :  { %1265 = vmatpush1.bf16.msra.mxu1 %v2175_v25  ;;  %v2232_v25 = vld [vmem:[%s3202_s2 + $0xe0] ss:$8 sps:$4 sm:$0xff]  }
 0x133   :  { %1266 = vmatprep.subr.bf16.mxu1 %v2183_v27  ;;  %1238 = vmatpush2.bf16.msra.mxu0 %v2226_v21  ;;  %v2240_v27 = vld [vmem:[%s3202_s2 + $0xd4] ss:$8 sps:$4 sm:$0xff]  }
 0x134   :  { %1239 = vmatprep.subr.bf16.mxu0 %v2234_v23 }
 0x136   :  { %1267 = vmatpush1.bf16.msra.mxu1 %v2181_v29  ;;  %v2238_v29 = vld [vmem:[%s3202_s2 + $0xd0] ss:$8 sps:$4 sm:$0xff]  }
 0x137   :  { %1268 = vmatprep.subr.bf16.mxu1 %v2189_v30  ;;  %1240 = vmatpush2.bf16.msra.mxu0 %v2232_v25  ;;  %v2241_v30 = vld [vmem:[%s3202_s2 + $0x1c0] ss:$8 sps:$4 sm:$0xff]  }
 0x138   :  { %1241 = vmatprep.subr.bf16.mxu0 %v2240_v27 }
 0x13a   :  { %1269 = vmatpush1.bf16.msra.mxu1 %v2187_v31  ;;  %v2246_v31 = vld [vmem:[%s3202_s2 + $0xc4] ss:$8 sps:$4 sm:$0xff]  }
 0x13b   :  { %1270 = vmatprep.subr.bf16.mxu1 %v2195_v52  ;;  %1242 = vmatpush2.bf16.msra.mxu0 %v2238_v29  ;;  %v2249_v52 = vld [vmem:[%s3202_s2 + $0x1b4] ss:$8 sps:$4 sm:$0xff]  }
 0x13c   :  { %1243 = vmatprep.subr.bf16.mxu0 %v2246_v31 }
 0x13e   :  { %1271 = vmatpush1.bf16.msra.mxu1 %v2193_v53  ;;  %v2244_v53 = vld [vmem:[%s3202_s2 + $0xc0] ss:$8 sps:$4 sm:$0xff]  }
 0x13f   :  { %1272 = vmatprep.subr.bf16.mxu1 %v2201_v55  ;;  %1244 = vmatpush2.bf16.msra.mxu0 %v2244_v53  ;;  %v2252_v55 = vld [vmem:[%s3202_s2 + $0xb4] ss:$8 sps:$4 sm:$0xff]   ;;  %v2906_v53 = vsub.s32 1, %v2692_v63 }
 0x140   :  { %1245 = vmatprep.subr.bf16.mxu0 %v2252_v55 }
 0x142   :  { %1273 = vmatpush1.bf16.msra.mxu1 %v2199_v57  ;;  %v2250_v57 = vld [vmem:[%s3202_s2 + $0xb0] ss:$8 sps:$4 sm:$0xff]  }
 0x143   :  { %1274 = vmatprep.subr.bf16.mxu1 %v2207_v59  ;;  %1246 = vmatpush2.bf16.msra.mxu0 %v2250_v57  ;;  %v2258_v59 = vld [vmem:[%s3202_s2 + $0xa4] ss:$8 sps:$4 sm:$0xff]  }
 0x144   :  { %1247 = vmatprep.subr.bf16.mxu0 %v2258_v59 }
 0x146   :  { %1275 = vmatpush1.bf16.msra.mxu1 %v2205_v61  ;;  %v2256_v61 = vld [vmem:[%s3202_s2 + $0xa0] ss:$8 sps:$4 sm:$0xff]  }
 0x147   :  { %1276 = vmatprep.subr.bf16.mxu1 %v2213_v3  ;;  %1248 = vmatpush2.bf16.msra.mxu0 %v2256_v61  ;;  %v2264_v3 = vld [vmem:[%s3202_s2 + $0x94] ss:$8 sps:$4 sm:$0xff]  }
 0x148   :  { %1249 = vmatprep.subr.bf16.mxu0 %v2264_v3 }
 0x14a   :  { %1277 = vmatpush1.bf16.msra.mxu1 %v2211_v5  ;;  %v2262_v5 = vld [vmem:[%s3202_s2 + $0x90] ss:$8 sps:$4 sm:$0xff]  }
 0x14b   :  { %1278 = vmatprep.subr.bf16.mxu1 %v2219_v9  ;;  %1250 = vmatpush2.bf16.msra.mxu0 %v2262_v5  ;;  %v2270_v9 = vld [vmem:[%s3202_s2 + $0x84] ss:$8 sps:$4 sm:$0xff]  }
 0x14c   :  { %1251 = vmatprep.subr.bf16.mxu0 %v2270_v9 }
 0x14e   :  { %1279 = vmatpush1.bf16.msra.mxu1 %v2217_v13  ;;  %v2273_v13 = vld [vmem:[%s3202_s2 + $0x274] ss:$8 sps:$4 sm:$0xff]  }
 0x14f   :  { %1280 = vmatprep.subr.bf16.mxu1 %v2225_v15  ;;  %1252 = vmatpush2.bf16.msra.mxu0 %v2268_v12 }
 0x150   :  { %1307 = vmatprep.subr.bf16.mxu0 %v2273_v13 }
 0x152   :  { %1281 = vmatpush2.bf16.msra.mxu1 %v2223_v18 }
 0x153   :  { %1282 = vmatprep.subr.bf16.mxu1 %v2231_v20 }
 0x156   :  { %1283 = vmatpush2.bf16.msra.mxu1 %v2229_v22 }
 0x157   :  { %1284 = vmatprep.subr.bf16.mxu1 %v2237_v24 }
 0x15a   :  { %1285 = vmatpush2.bf16.msra.mxu1 %v2235_v26 }
 0x15b   :  { %1286 = vmatprep.subr.bf16.mxu1 %v2243_v28 }
 0x15e   :  { %1287 = vmatpush2.bf16.msra.mxu1 %v2241_v30 }
 0x15f   :  { %1288 = vmatprep.subr.bf16.mxu1 %v2249_v52 }
 0x162   :  { %1289 = vmatpush2.bf16.msra.mxu1 %v2247_v54 }
 0x163   :  { %1290 = vmatprep.subr.bf16.mxu1 %v2255_v56 }
 0x166   :  { %1291 = vmatpush2.bf16.msra.mxu1 %v2253_v58 }
 0x167   :  { %1292 = vmatprep.subr.bf16.mxu1 %v2261_v60  ;;  %v2911_v60 = vsub.s32 2, %v2692_v63 }
 0x16a   :  { %1293 = vmatpush2.bf16.msra.mxu1 %v2259_v62 }
 0x16b   :  { %1294 = vmatprep.subr.bf16.mxu1 %v2267_v4 }
 0x16e   :  { %1295 = vmatpush2.bf16.msra.mxu1 %v2265_v6 }
 0x16f   :  { %1406 = vmatprep.subr.bf16.mxu1 %v2503_v10 }
 0x1f1   :  { %v508_v14 = vpop.f32.mrf.mxu1 }
 0x1f2   :  { %v517_v15 = vrot.slane %v508_v14, 2 }
 0x1f3   :  { %v510_v17 = vpop.f32.mrf.mxu1 }
 0x1f4   :  { %v521_v18 = vadd.f32 %v517_v15, %v508_v14  ;;  %v518_v10 = vrot.slane %v510_v17, 2 }
 0x1f5   :  { %v512_v19 = vpop.f32.mrf.mxu1 }
 0x1f6   :  { %v523_v20 = vmul.f32 %v521_v18, %v521_v18  ;;  %v522_v21 = vadd.f32 %v518_v10, %v510_v17  ;;  %v599_v10 = vpop.permute.xlu0 %598  ;;  %v621_v19 = vpop.permute.xlu1 %620 }
 0x1f7   :  { %v513_v22 = vpop.f32.mrf.mxu1 }
 0x1f8   :  { %v527_v23 = vrot.slane %v523_v20, 7  ;;  %v524_v24 = vmul.f32 %v522_v21, %v522_v21 }
 0x1fa   :  { %v531_v25 = vsub.f32 %v521_v18, %v527_v23  ;;  %v528_v26 = vrot.slane %v524_v24, 7 }
 0x1fc   :  { %v533_v27 = vadd.f32 1e-05, %v531_v25  ;;  %v532_v28 = vsub.f32 %v522_v21, %v528_v26 }
 0x1fe   :  { %2343 = vrsqrt.f32 %v533_v27  ;;  %v534_v29 = vadd.f32 1e-05, %v532_v28 }
 0x200   :  { %2345 = vrsqrt.f32 %v534_v29 }
 0x20b   :  { %v2344_v30 = vpop.eup %2343 }
 0x20c   :  { %v537_v31 = vmul.f32 %v2344_v30, %v2697_v1 }
 0x20d   :  { %v2346_v52 = vpop.eup %2345 }
 0x20e   :  { %v553_v54 = vrot.slane %v537_v31, 1  ;;  %v538_v55 = vmul.f32 %v2346_v52, %v2699_v2  ;;  %v542_v58 = vrot.slane %v537_v31, %v2906_v53 }
 0x210   :  { %v557_v56 = vmul.f32 %v553_v54, %v521_v18  ;;  %v554_v57 = vrot.slane %v538_v55, 1  ;;  %v546_v62 = vrot.slane %v538_v55, %v2906_v53  ;;  %v547_v9 = vmul.f32 %v542_v58, %v2705_v7  ;;  %v604_v54 = vpop.permute.xlu0 %603 }
 0x211   :  { %v549_v12 = vmul.f32 %v542_v58, %v2709_v11 }
 0x212   :  { %v561_v59 = vrot.slane %v557_v56, 6  ;;  %v558_v61 = vmul.f32 %v554_v57, %v522_v21  ;;  %v548_v13 = vmul.f32 %v546_v62, %v2707_v8  ;;  %v550_v15 = vmul.f32 %v546_v62, %v2717_v16  ;;  %v625_v56 = vpop.permute.xlu1 %624 }
 0x214   :  { %v565_v3 = vsub.f32 %v2697_v1, %v561_v59  ;;  %v562_v4 = vrot.slane %v558_v61, 6 }
 0x216   :  { %v570_v5 = vrot.slane %v565_v3, %v2911_v60  ;;  %v566_v6 = vsub.f32 %v2699_v2, %v562_v4 }
 0x218   :  { %v574_v14 = vrot.slane %v566_v6, %v2911_v60  ;;  %v575_v17 = vadd.f32 %v570_v5, %v547_v9  ;;  %v577_v18 = vadd.f32 %v570_v5, %v549_v12 }
 0x21a   :  { %v576_v20 = vadd.f32 %v574_v14, %v548_v13  ;;  %v578_v21 = vadd.f32 %v574_v14, %v550_v15  ;;  %v579_v22 = vmax.f32 %v575_v17, 0.0  ;;  %v581_v23 = vmax.f32 %v577_v18, 0.0  ;;  %v2271_v17 = vld [vmem:[%s3202_s2 + $0x270] ss:$8 sps:$4 sm:$0xff]  }
 0x21c   :  { %v580_v7 = vmax.f32 %v576_v20, 0.0  ;;  %v582_v11 = vmax.f32 %v578_v21, 0.0  ;;  %v585_v24 = vrot.slane %v579_v22, 7  ;;  %v587_v8 = vrot.slane %v581_v23, 7 }
 0x21d   :  { %v610_v25 = vrot.slane %v579_v22, 1  ;;  %v612_v26 = vrot.slane %v581_v23, 1  ;;  %v633_v20 = vpack.c.bf16 %v581_v23, %v579_v22  ;;  %v2279_v22 = vld [vmem:[%s3202_s2 + $0x254] ss:$8 sps:$4 sm:$0xff]   ;;  %v2353_v23 = vld [vmem:[%s3204_s4 + $0x70] ss:$8 sps:$4 sm:$0xff]  }
 0x21e   :  { %v586_v27 = vrot.slane %v580_v7, 7  ;;  %v588_v16 = vrot.slane %v582_v11, 7  ;;  %v594_v28 = vsel %vm591_vm1, %v587_v8, %v585_v24  ;;  %v611_v29 = vrot.slane %v580_v7, 1 }
 0x21f   :  { %v606_v30 = vmul.f32 %v599_v10, %v594_v28  ;;  %v613_v31 = vrot.slane %v582_v11, 1  ;;  %v615_v52 = vsel %vm614_vm2, %v610_v25, %v612_v26  ;;  %v592_v55 = vsel %vm591_vm1, %v585_v24, %v587_v8  ;;  %v2277_v24 = vld [vmem:[%s3202_s2 + $0x250] ss:$8 sps:$4 sm:$0xff]   ;;  %v2282_v8 = vld [vmem:[%s3202_s2 + $0x244] ss:$8 sps:$4 sm:$0xff]  }
 0x220   :  { %v595_v57 = vsel %vm591_vm1, %v588_v16, %v586_v27  ;;  %v2932_v58 = vmul.f32 %v621_v19, %v615_v52  ;;  %v593_v59 = vsel %vm591_vm1, %v586_v27, %v588_v16  ;;  %v608_v61 = vmul.f32 %v604_v54, %v592_v55  ;;  %v2280_v27 = vld [vmem:[%s3202_s2 + $0x240] ss:$8 sps:$4 sm:$0xff]   ;;  %v2285_v16 = vld [vmem:[%s3202_s2 + $0x234] ss:$8 sps:$4 sm:$0xff]   ;;  %v2357_v28 = vld [vmem:[%s3204_s4 + $0x50] ss:$8 sps:$4 sm:$0xff]  }
 0x221   :  { %v607_v62 = vmul.f32 %v599_v10, %v595_v57  ;;  %v616_v3 = vsel %vm614_vm2, %v611_v29, %v613_v31  ;;  %v609_v4 = vmul.f32 %v604_v54, %v593_v59  ;;  %v617_v5 = vsel %vm614_vm2, %v612_v26, %v610_v25  ;;  %v2355_v25 = vld [vmem:[%s3204_s4 + $0x60] ss:$8 sps:$4 sm:$0xff]   ;;  %v2356_v26 = vld [vmem:[%s3204_s4 + $0x54] ss:$8 sps:$4 sm:$0xff]   ;;  %v2361_v57 = vld [vmem:[%s3204_s4 + $0x30] ss:$8 sps:$4 sm:$0xff]  }
 0x222   :  { %v628_v6 = vmul.f32 %v621_v19, %v616_v3  ;;  %v618_v9 = vsel %vm614_vm2, %v613_v31, %v611_v29  ;;  %v2942_v12 = vmul.f32 %v625_v56, %v617_v5  ;;  %v634_v15 = vpack.c.bf16 %v582_v11, %v580_v7  ;;  %v2276_v19 = vld [vmem:[%s3202_s2 + $0x264] ss:$8 sps:$4 sm:$0xff]   ;;  %v2274_v7 = vld [vmem:[%s3202_s2 + $0x260] ss:$8 sps:$4 sm:$0xff]   ;;  %v2360_v54 = vld [vmem:[%s3204_s4 + $0x34] ss:$8 sps:$4 sm:$0xff]  }
 0x223   :  { %v632_v13 = vpack.c.bf16 %v609_v4, %v607_v62  ;;  %v630_v14 = vmul.f32 %v625_v56, %v618_v9  ;;  %v631_v18 = vpack.c.bf16 %v608_v61, %v606_v30  ;;  %v2354_v11 = vld [vmem:[%s3204_s4 + $0x64] ss:$8 sps:$4 sm:$0xff]   ;;  %v2283_v30 = vld [vmem:[%s3202_s2 + $0x230] ss:$8 sps:$4 sm:$0xff]   ;;  %v2359_v52 = vld [vmem:[%s3204_s4 + $0x40] ss:$8 sps:$4 sm:$0xff]  }
 0x224   :  { %v635_v10 = vpack.c.bf16 %v2942_v12, %v2932_v58  ;;  %1296 = vmatprep.mubr.bf16.mxu1 %v634_v15  ;;  %v2358_v29 = vld [vmem:[%s3204_s4 + $0x44] ss:$8 sps:$4 sm:$0xff]   ;;  %v2286_v55 = vld [vmem:[%s3202_s2 + $0x220] ss:$8 sps:$4 sm:$0xff]   ;;  %v2291_v56 = vld [vmem:[%s3202_s2 + $0x214] ss:$8 sps:$4 sm:$0xff]  }
 0x225   :  { %v636_v21 = vpack.c.bf16 %v630_v14, %v628_v6  ;;  %1253 = vmatprep.mubr.bf16.mxu0 %v632_v13  ;;  %1297 = vmatmul.mubr.bf16.vlgmr.msra.gmra.mxu1 %v633_v20  ;;  %v2288_v31 = vld [vmem:[%s3202_s2 + $0x224] ss:$8 sps:$4 sm:$0xff]   ;;  %v2289_v61 = vld [vmem:[%s3202_s2 + $0x210] ss:$8 sps:$4 sm:$0xff]   ;;  %v2363_v3 = vld [vmem:[%s3204_s4 + $0x20] ss:$8 sps:$4 sm:$0xff]  }
 0x226   :  { %1254 = vmatmul.mubr.bf16.vlgmr.msra.gmra.mxu0 %v631_v18  ;;  %1407 = vmatpush1.bf16.msra.mxu1 %v2353_v23  ;;  %v2362_v59 = vld [vmem:[%s3204_s4 + $0x24] ss:$8 sps:$4 sm:$0xff]   ;;  %v2292_v4 = vld [vmem:[%s3202_s2 + $0x200] ss:$8 sps:$4 sm:$0xff]   ;;  %v2297_v5 = vld [vmem:[%s3202_s2 + $0x2f4] ss:$8 sps:$4 sm:$0xff]  }
 0x227   :  { %1308 = vmatpush1.bf16.msra.mxu0 %v2271_v17  ;;  %1339 = vmatprep.mubr.bf16.mxu0 %v636_v21  ;;  %v2294_v62 = vld [vmem:[%s3202_s2 + $0x204] ss:$8 sps:$4 sm:$0xff]   ;;  %v2295_v6 = vld [vmem:[%s3202_s2 + $0x2f0] ss:$8 sps:$4 sm:$0xff]  }
 0x228   :  { %1309 = vmatprep.subr.bf16.mxu0 %v2276_v19  ;;  %1408 = vmatprep.subr.bf16.mxu1 %v2354_v11 }
 0x22a   :  { %1409 = vmatpush1.bf16.msra.mxu1 %v2355_v25 }
 0x22b   :  { %1310 = vmatpush1.bf16.msra.mxu0 %v2274_v7  ;;  %1410 = vmatprep.subr.bf16.mxu1 %v2356_v26 }
 0x22c   :  { %1311 = vmatprep.subr.bf16.mxu0 %v2279_v22 }
 0x22e   :  { %1411 = vmatpush1.bf16.msra.mxu1 %v2357_v28 }
 0x22f   :  { %1312 = vmatpush1.bf16.msra.mxu0 %v2277_v24  ;;  %1412 = vmatprep.subr.bf16.mxu1 %v2358_v29 }
 0x230   :  { %1313 = vmatprep.subr.bf16.mxu0 %v2282_v8 }
 0x232   :  { %1413 = vmatpush1.bf16.msra.mxu1 %v2359_v52 }
 0x233   :  { %1314 = vmatpush1.bf16.msra.mxu0 %v2280_v27  ;;  %1414 = vmatprep.subr.bf16.mxu1 %v2360_v54 }
 0x234   :  { %1315 = vmatprep.subr.bf16.mxu0 %v2285_v16 }
 0x236   :  { %1415 = vmatpush1.bf16.msra.mxu1 %v2361_v57 }
 0x237   :  { %1316 = vmatpush1.bf16.msra.mxu0 %v2283_v30  ;;  %1416 = vmatprep.subr.bf16.mxu1 %v2362_v59 }
 0x238   :  { %1317 = vmatprep.subr.bf16.mxu0 %v2288_v31 }
 0x23a   :  { %1417 = vmatpush1.bf16.msra.mxu1 %v2363_v3 }
 0x23b   :  { %1318 = vmatpush1.bf16.msra.mxu0 %v2286_v55  ;;  %1418 = vmatprep.subr.bf16.mxu1 %v2548_v32  ;;  %v2300_v32 = vld [vmem:[%s3202_s2 + $0x2e4] ss:$8 sps:$4 sm:$0xff]  }
 0x23c   :  { %1319 = vmatprep.subr.bf16.mxu0 %v2291_v56 }
 0x23e   :  { %1419 = vmatpush1.bf16.msra.mxu1 %v2553_v33  ;;  %v2298_v33 = vld [vmem:[%s3202_s2 + $0x2e0] ss:$8 sps:$4 sm:$0xff]  }
 0x23f   :  { %1320 = vmatpush1.bf16.msra.mxu0 %v2289_v61  ;;  %1420 = vmatprep.subr.bf16.mxu1 %v2560_v34  ;;  %v2303_v34 = vld [vmem:[%s3202_s2 + $0x2d4] ss:$8 sps:$4 sm:$0xff]  }
 0x240   :  { %1321 = vmatprep.subr.bf16.mxu0 %v2294_v62 }
 0x242   :  { %1421 = vmatpush1.bf16.msra.mxu1 %v2565_v35  ;;  %v2301_v35 = vld [vmem:[%s3202_s2 + $0x2d0] ss:$8 sps:$4 sm:$0xff]  }
 0x243   :  { %1322 = vmatpush1.bf16.msra.mxu0 %v2292_v4  ;;  %1422 = vmatprep.subr.bf16.mxu1 %v2572_v36  ;;  %v2306_v36 = vld [vmem:[%s3202_s2 + $0x2c4] ss:$8 sps:$4 sm:$0xff]  }
 0x244   :  { %1323 = vmatprep.subr.bf16.mxu0 %v2297_v5 }
 0x246   :  { %1423 = vmatpush2.bf16.msra.mxu1 %v2577_v37  ;;  %v2304_v37 = vld [vmem:[%s3202_s2 + $0x2c0] ss:$8 sps:$4 sm:$0xff]  }
 0x247   :  { %1324 = vmatpush2.bf16.msra.mxu0 %v2295_v6  ;;  %1424 = vmatprep.subr.bf16.mxu1 %v2584_v38  ;;  %v2309_v38 = vld [vmem:[%s3202_s2 + $0x2b4] ss:$8 sps:$4 sm:$0xff]  }
 0x248   :  { %1325 = vmatprep.subr.bf16.mxu0 %v2300_v32 }
 0x24a   :  { %1425 = vmatpush2.bf16.msra.mxu1 %v2589_v39  ;;  %v2307_v39 = vld [vmem:[%s3202_s2 + $0x2b0] ss:$8 sps:$4 sm:$0xff]  }
 0x24b   :  { %1326 = vmatpush2.bf16.msra.mxu0 %v2298_v33  ;;  %1426 = vmatprep.subr.bf16.mxu1 %v2596_v40  ;;  %v2312_v40 = vld [vmem:[%s3202_s2 + $0x2a4] ss:$8 sps:$4 sm:$0xff]  }
 0x24c   :  { %1327 = vmatprep.subr.bf16.mxu0 %v2303_v34 }
 0x24e   :  { %1427 = vmatpush2.bf16.msra.mxu1 %v2601_v41  ;;  %v2310_v41 = vld [vmem:[%s3202_s2 + $0x2a0] ss:$8 sps:$4 sm:$0xff]  }
 0x24f   :  { %1328 = vmatpush2.bf16.msra.mxu0 %v2301_v35  ;;  %1428 = vmatprep.subr.bf16.mxu1 %v2608_v42  ;;  %v2315_v42 = vld [vmem:[%s3202_s2 + $0x294] ss:$8 sps:$4 sm:$0xff]  }
 0x250   :  { %1329 = vmatprep.subr.bf16.mxu0 %v2306_v36 }
 0x252   :  { %1429 = vmatpush2.bf16.msra.mxu1 %v2613_v43  ;;  %v2313_v43 = vld [vmem:[%s3202_s2 + $0x290] ss:$8 sps:$4 sm:$0xff]  }
 0x253   :  { %1330 = vmatpush2.bf16.msra.mxu0 %v2304_v37  ;;  %1430 = vmatprep.subr.bf16.mxu1 %v2618_v44  ;;  %v2318_v44 = vld [vmem:[%s3202_s2 + $0x284] ss:$8 sps:$4 sm:$0xff]  }
 0x254   :  { %1331 = vmatprep.subr.bf16.mxu0 %v2309_v38 }
 0x256   :  { %1431 = vmatpush2.bf16.msra.mxu1 %v2625_v45  ;;  %v2316_v45 = vld [vmem:[%s3202_s2 + $0x280] ss:$8 sps:$4 sm:$0xff]  }
 0x257   :  { %1332 = vmatpush2.bf16.msra.mxu0 %v2307_v39  ;;  %1432 = vmatprep.subr.bf16.mxu1 %v2631_v46 }
 0x258   :  { %1333 = vmatprep.subr.bf16.mxu0 %v2312_v40 }
 0x25a   :  { %1433 = vmatpush2.bf16.msra.mxu1 %v2637_v47  ;;  %v735_v47 = vsub.s32 3, %v2692_v63 }
 0x25b   :  { %1334 = vmatpush2.bf16.msra.mxu0 %v2310_v41  ;;  %1434 = vmatprep.subr.bf16.mxu1 %v2643_v48 }
 0x25c   :  { %1335 = vmatprep.subr.bf16.mxu0 %v2315_v42  ;;  %v736_v13 = vrot.slane %v2697_v1, %v735_v47  ;;  %v740_v14 = vrot.slane %v2699_v2, %v735_v47 }
 0x25e   :  { %1435 = vmatpush2.bf16.msra.mxu1 %v2649_v49 }
 0x25f   :  { %1336 = vmatpush2.bf16.msra.mxu0 %v2313_v43  ;;  %1436 = vmatprep.subr.bf16.mxu1 %v2655_v50 }
 0x260   :  { %1337 = vmatprep.subr.bf16.mxu0 %v2318_v44 }
 0x262   :  { %1437 = vmatpush2.bf16.msra.mxu1 %v2661_v51 }
 0x263   :  { %1338 = vmatpush2.bf16.msra.mxu0 %v2316_v45 }
 0x266   :  { %1340 = vmatmul.mubr.bf16.vlgmr.msra.gmra.mxu0 %v635_v10 }
 0x2e5   :  { %v1298_v9 = vpop.f32.mrf.mxu1 }
 0x2e6   :  { %v1255_v46 = vpop.f32.mrf.mxu0 }
 0x2e7   :  { %v1300_v49 = vpop.f32.mrf.mxu1  ;;  %v1256_v17 = vadd.f32 %v1255_v46, %v736_v13 }
 0x2e8   :  { %v1257_v48 = vpop.f32.mrf.mxu0 }
 0x2e9   :  { %v1258_v50 = vadd.f32 %v1257_v48, %v740_v14  ;;  %v1302_v51 = vpop.f32.mrf.mxu1  ;;  %v1299_v58 = vadd.f32 %v1298_v9, %v1256_v17 }
 0x2ea   :  { %v1259_v15 = vpop.f32.mrf.mxu0 }
 0x2eb   :  { %v1260_v20 = vadd.f32 %v1259_v15, %v736_v13  ;;  %v1301_v12 = vadd.f32 %v1300_v49, %v1258_v50  ;;  %v1304_v23 = vpop.f32.mrf.mxu1 }
 0x2ec   :  { %v1261_v18 = vpop.f32.mrf.mxu0 }
 0x2ed   :  { %v1262_v21 = vadd.f32 %v1261_v18, %v740_v14  ;;  %v1303_v22 = vadd.f32 %v1302_v51, %v1260_v20 }
 0x2ef   :  { %v1305_v25 = vadd.f32 %v1304_v23, %v1262_v21  ;;  %v2321_v23 = vld [vmem:[%s3203_s3 + $0x70] sm:$0xff]  }
 0x326   :  { %v1341_v19 = vpop.f32.mrf.mxu0 }
 0x327   :  { %v3098_v7 = vadd.f32 %v1341_v19, %v1299_v58 }
 0x328   :  { %v1343_v10 = vpop.f32.mrf.mxu0 }
 0x329   :  { %v3100_v11 = vadd.f32 %v1343_v10, %v1301_v12  ;;  %v1364_v27 = vmul.f32 %v3098_v7, %v3098_v7  ;;  %v2319_v10 = vld [vmem:[%s3203_s3 + $0x78] sm:$0xff]  }
 0x32a   :  { %v1345_v24 = vpop.f32.mrf.mxu0  ;;  %2038 = vmatprep.subr.bf16.mxu0 %v2319_v10 }
 0x32b   :  { %v3102_v8 = vadd.f32 %v1345_v24, %v1303_v22  ;;  %v1365_v30 = vmul.f32 %v3100_v11, %v3100_v11  ;;  %v2320_v22 = vld [vmem:[%s3203_s3 + $0x38] sm:$0xff]   ;;  %v2322_v24 = vld [vmem:[%s3203_s3 + $0x30] sm:$0xff]  }
 0x32c   :  { %v1347_v26 = vpop.f32.mrf.mxu0  ;;  %2039 = vmatpush3.bf16.msra.mxu0 %v2320_v22 }
 0x32d   :  { %v1350_v16 = vadd.f32 %v3102_v8, %v3098_v7  ;;  %v1366_v28 = vmul.f32 %v3102_v8, %v3102_v8  ;;  %v3110_v29 = vadd.f32 %v1347_v26, %v1305_v25  ;;  %2040 = vmatprep.subr.bf16.mxu0 %v2321_v23  ;;  %v2323_v25 = vld [vmem:[%s3203_s3 + $0x68] sm:$0xff]  }
 0x32e   :  { %v2324_v26 = vld [vmem:[%s3203_s3 + $0x28] sm:$0xff]  }
 0x32f   :  { %v1351_v31 = vrot.slane %v1350_v16, 4  ;;  %v1368_v52 = vadd.f32 %v1366_v28, %v1364_v27  ;;  %v1357_v54 = vadd.f32 %v3110_v29, %v3100_v11  ;;  %v1367_v55 = vmul.f32 %v3110_v29, %v3110_v29  ;;  %v2325_v27 = vld [vmem:[%s3203_s3 + $0x60] sm:$0xff]   ;;  %v2327_v28 = vld [vmem:[%s3203_s3 + $0x58] sm:$0xff]  }
 0x330   :  { %2041 = vmatpush3.bf16.msra.mxu0 %v2322_v24 }
 0x331   :  { %v1352_v56 = vadd.f32 %v1351_v31, %v1350_v16  ;;  %v1369_v57 = vrot.slane %v1368_v52, 4  ;;  %v1358_v59 = vrot.slane %v1357_v54, 4  ;;  %v1375_v61 = vadd.f32 %v1367_v55, %v1365_v30  ;;  %2042 = vmatprep.subr.bf16.mxu0 %v2323_v25  ;;  %v2326_v16 = vld [vmem:[%s3203_s3 + $0x20] sm:$0xff]   ;;  %v2328_v30 = vld [vmem:[%s3203_s3 + $0x18] sm:$0xff]   ;;  %v2329_v31 = vld [vmem:[%s3203_s3 + $0x50] sm:$0xff]  }
 0x332   :  { %v2332_v55 = vld [vmem:[%s3203_s3 + $0x8] sm:$0xff]  }
 0x333   :  { %v1353_v62 = vrot.slane %v1352_v56, 2  ;;  %v1370_v3 = vadd.f32 %v1369_v57, %v1368_v52  ;;  %v1359_v4 = vadd.f32 %v1358_v59, %v1357_v54  ;;  %v1376_v5 = vrot.slane %v1375_v61, 4  ;;  %v2330_v52 = vld [vmem:[%s3203_s3 + $0x10] sm:$0xff]   ;;  %v2331_v54 = vld [vmem:[%s3203_s3 + $0x48] sm:$0xff]   ;;  %v2334_v57 = vld [vmem:[%s3203_s3] sm:$0xff]  }
 0x334   :  { %2043 = vmatpush3.bf16.msra.mxu0 %v2324_v26 }
 0x335   :  { %v1354_v6 = vadd.f32 %v1353_v62, %v1352_v56  ;;  %v1371_v32 = vrot.slane %v1370_v3, 2  ;;  %v1360_v33 = vrot.slane %v1359_v4, 2  ;;  %v1377_v34 = vadd.f32 %v1376_v5, %v1375_v61  ;;  %2044 = vmatprep.subr.bf16.mxu0 %v2325_v27  ;;  %v2333_v56 = vld [vmem:[%s3203_s3 + $0x40] sm:$0xff]  }
 0x337   :  { %v1355_v35 = vrot.slane %v1354_v6, 1  ;;  %v1372_v36 = vadd.f32 %v1371_v32, %v1370_v3  ;;  %v1361_v37 = vadd.f32 %v1360_v33, %v1359_v4  ;;  %v1378_v38 = vrot.slane %v1377_v34, 2 }
 0x338   :  { %2045 = vmatpush3.bf16.msra.mxu0 %v2326_v16 }
 0x339   :  { %v1373_v39 = vrot.slane %v1372_v36, 1  ;;  %v1362_v40 = vrot.slane %v1361_v37, 1  ;;  %v1379_v41 = vadd.f32 %v1378_v38, %v1377_v34  ;;  %v1356_v42 = vadd.f32 %v1355_v35, %v1354_v6  ;;  %2046 = vmatprep.subr.bf16.mxu0 %v2327_v28 }
 0x33b   :  { %v1374_v43 = vadd.f32 %v1373_v39, %v1372_v36  ;;  %v1380_v44 = vrot.slane %v1379_v41, 1  ;;  %v1363_v45 = vadd.f32 %v1362_v40, %v1361_v37 }
 0x33c   :  { %2047 = vmatpush3.bf16.msra.mxu0 %v2328_v30  ;;  %v2338_v30 = vld [vmem:[#allocation4 + $0x20] sm:$0xff]  }
 0x33d   :  { %v1381_v46 = vadd.f32 %v1380_v44, %v1379_v41  ;;  %v1382_v47 = vsel %vm257_vm0, %v1356_v42, %v1374_v43  ;;  %2048 = vmatprep.subr.bf16.mxu0 %v2329_v31  ;;  %v2339_v31 = vld [vmem:[#allocation4 + $0x18] sm:$0xff]  }
 0x33e   :  { %v1384_v48 = vmul.f32 0.001953125, %v1382_v47 }
 0x33f   :  { %v1383_v9 = vsel %vm257_vm0, %v1363_v45, %v1381_v46  ;;  %v1479_v46 = vsub.s32 4, %v2692_v63 }
 0x340   :  { %v1385_v13 = vmul.f32 0.001953125, %v1383_v9  ;;  %v1386_v14 = vpack.c.bf16 %v1384_v48, %v1384_v48  ;;  %2049 = vmatpush3.bf16.msra.mxu0 %v2330_v52  ;;  %v2340_v52 = vld [vmem:[#allocation4 + $0x10] sm:$0xff]  }
 0x341   :  { %2050 = vmatprep.subr.bf16.mxu0 %v2331_v54  ;;  %v2341_v54 = vld [vmem:[#allocation4 + $0x8] sm:$0xff]  }
 0x342   :  { %v1387_v15 = vpack.c.bf16 %v1385_v13, %v1385_v13  ;;  %v1388_v49 = vunpack.c.l.bf16 %v1386_v14 }
 0x344   :  { %v1389_v17 = vunpack.c.l.bf16 %v1387_v15  ;;  %v1390_v50 = vsub.f32 %v1384_v48, %v1388_v49  ;;  %2051 = vmatpush3.bf16.msra.mxu0 %v2332_v55  ;;  %v2342_v55 = vld [vmem:[#allocation4] sm:$0xff]  }
 0x345   :  { %2052 = vmatprep.subr.bf16.mxu0 %v2333_v56 }
 0x346   :  { %v1391_v18 = vsub.f32 %v1385_v13, %v1389_v17  ;;  %v1392_v20 = vpack.c.bf16 %v1390_v50, %v1390_v50  ;;  %v1507_v17 = vsub.s32 5, %v2692_v63 }
 0x348   :  { %v1393_v51 = vpack.c.bf16 %v1391_v18, %v1391_v18  ;;  %v1396_v19 = vrot.slane %v1392_v20, 7  ;;  %2053 = vmatpush3.bf16.msra.mxu0 %v2334_v57  ;;  %v76_v57 = vld [vmem:[%s3207_s7] sm:$0x7] }
 0x34a   :  { %v1397_v21 = vrot.slane %v1393_v51, 7  ;;  %v1400_v12 = vsel %vm257_vm0, %v1386_v14, %v1396_v19 }
 0x34c   :  { %v1404_v58 = vsel %vm257_vm0, %v1387_v15, %v1397_v21 }
 0x34d   :  { %1438 = vmatprep.mubr.bf16.mxu1 %v1404_v58 }
 0x34e   :  { %1439 = vmatmul.mubr.bf16.vlgmr.msra.gmra.mxu1 %v1400_v12 }
 0x40e   :  { %v1440_v59 = vpop.f32.mrf.mxu1 }
 0x40f   :  { %v1449_v61 = vrot.slane %v1440_v59, 2 }
 0x410   :  { %v1442_v62 = vpop.f32.mrf.mxu1 }
 0x411   :  { %v1453_v3 = vadd.f32 %v1449_v61, %v1440_v59  ;;  %v1450_v4 = vrot.slane %v1442_v62, 2  ;;  %v1558_v61 = vrot.slane %v76_v57, %v2695_v0 }
 0x412   :  { %v1444_v5 = vpop.f32.mrf.mxu1 }
 0x413   :  { %v1455_v6 = vmul.f32 %v1453_v3, %v1453_v3  ;;  %v1454_v32 = vadd.f32 %v1450_v4, %v1442_v62 }
 0x414   :  { %v1445_v33 = vpop.f32.mrf.mxu1 }
 0x415   :  { %v1459_v34 = vrot.slane %v1455_v6, 7  ;;  %v1456_v35 = vmul.f32 %v1454_v32, %v1454_v32 }
 0x417   :  { %v1463_v36 = vsub.f32 %v1453_v3, %v1459_v34  ;;  %v1460_v37 = vrot.slane %v1456_v35, 7 }
 0x419   :  { %v1465_v38 = vadd.f32 1e-05, %v1463_v36  ;;  %v1464_v39 = vsub.f32 %v1454_v32, %v1460_v37 }
 0x41b   :  { %2347 = vrsqrt.f32 %v1465_v38  ;;  %v1466_v40 = vadd.f32 1e-05, %v1464_v39 }
 0x41d   :  { %2349 = vrsqrt.f32 %v1466_v40 }
 0x428   :  { %v2348_v41 = vpop.eup %2347 }
 0x429   :  { %v1471_v42 = vrot.slane %v2348_v41, 5 }
 0x42a   :  { %v2350_v43 = vpop.eup %2349 }
 0x42b   :  { %v1475_v44 = vmul.f32 %v1471_v42, %v2697_v1  ;;  %v1472_v45 = vrot.slane %v2350_v43, 5 }
 0x42d   :  { %v1491_v47 = vrot.slane %v1475_v44, 4  ;;  %v1476_v48 = vmul.f32 %v1472_v45, %v2699_v2  ;;  %v1480_v14 = vrot.slane %v1475_v44, %v1479_v46 }
 0x42f   :  { %v1495_v9 = vmul.f32 %v1491_v47, %v1453_v3  ;;  %v1492_v13 = vrot.slane %v1476_v48, 4  ;;  %v1484_v50 = vrot.slane %v1476_v48, %v1479_v46  ;;  %v1485_v19 = vmul.f32 %v1480_v14, %v3098_v7  ;;  %v2335_v7 = vld [vmem:[#allocation4 + $0x38] sm:$0xff]  }
 0x430   :  { %v1487_v21 = vmul.f32 %v1480_v14, %v3102_v8  ;;  %v2439_v8 = vmov 0.0  }
 0x431   :  { %v1499_v15 = vrot.slane %v1495_v9, 3  ;;  %v1496_v49 = vmul.f32 %v1492_v13, %v1454_v32  ;;  %v1486_v12 = vmul.f32 %v1484_v50, %v3100_v11  ;;  %v1488_v10 = vmul.f32 %v1484_v50, %v3110_v29  ;;  %2069 = vmatprep.subr.bf16.mxu0 %v2439_v8  ;;  %v2336_v11 = vld [vmem:[#allocation4 + $0x30] sm:$0xff]   ;;  %v2337_v29 = vld [vmem:[#allocation4 + $0x28] sm:$0xff]  }
 0x433   :  { %v1503_v18 = vsub.f32 %v2697_v1, %v1499_v15  ;;  %v1500_v20 = vrot.slane %v1496_v49, 3 }
 0x435   :  { %v1504_v51 = vsub.f32 %v2699_v2, %v1500_v20  ;;  %v1508_v58 = vrot.slane %v1503_v18, %v1507_v17 }
 0x437   :  { %v1512_v22 = vrot.slane %v1504_v51, %v1507_v17  ;;  %v1513_v23 = vadd.f32 %v1508_v58, %v1485_v19  ;;  %v1515_v24 = vadd.f32 %v1508_v58, %v1487_v21 }
 0x439   :  { %v1514_v25 = vadd.f32 %v1512_v22, %v1486_v12  ;;  %v1516_v63 = vadd.f32 %v1512_v22, %v1488_v10  ;;  %v1517_v26 = vmax.f32 %v1513_v23, 0.0  ;;  %v1519_v27 = vmax.f32 %v1515_v24, 0.0 }
 0x43b   :  { %v1518_v1 = vmax.f32 %v1514_v25, 0.0  ;;  %v1520_v16 = vmax.f32 %v1516_v63, 0.0  ;;  %v1521_v2 = vpack.c.bf16 %v1519_v27, %v1517_v26 }
 0x43d   :  { %v1522_v28 = vpack.c.bf16 %v1520_v16, %v1518_v1 }
 0x43f   :  { %1687 = vmatprep.mubr.bf16.mxu0 %v1522_v28 }
 0x440   :  { %1688 = vmatmul.mubr.bf16.vlgmr.msra.gmra.mxu0 %v1521_v2 }
 0x441   :  { %2070 = vmatpush3.bf16.msra.mxu0 %v2335_v7  ;;  %2085 = vmatprep.mubr.msk.bf16.mxu0 %vm2440_vm3, %v2439_v8 }
 0x442   :  { %2071 = vmatprep.subr.bf16.mxu0 %v2439_v8 }
 0x445   :  { %2072 = vmatpush3.bf16.msra.mxu0 %v2336_v11 }
 0x446   :  { %2073 = vmatprep.subr.bf16.mxu0 %v2439_v8 }
 0x449   :  { %2074 = vmatpush3.bf16.msra.mxu0 %v2337_v29  ;;  %v2364_v29 = vld [vmem:[%s3200_s0] sm:$0xff] }
 0x44a   :  { %2075 = vmatprep.subr.bf16.mxu0 %v2439_v8 }
 0x44d   :  { %2076 = vmatpush3.bf16.msra.mxu0 %v2338_v30 }
 0x44e   :  { %2077 = vmatprep.subr.bf16.mxu0 %v2439_v8 }
 0x451   :  { %2078 = vmatpush3.bf16.msra.mxu0 %v2339_v31  ;;  %v2365_v31 = vld [vmem:[%s3200_s0 + $0x8] sm:$0xff] }
 0x452   :  { %2079 = vmatprep.subr.bf16.mxu0 %v2439_v8 }
 0x455   :  { %2080 = vmatpush3.bf16.msra.mxu0 %v2340_v52 }
 0x456   :  { %2081 = vmatprep.subr.bf16.mxu0 %v2439_v8 }
 0x459   :  { %2082 = vmatpush3.bf16.msra.mxu0 %v2341_v54 }
 0x45a   :  { %2083 = vmatprep.subr.bf16.mxu0 %v2439_v8 }
 0x45d   :  { %2084 = vmatpush3.bf16.msra.mxu0 %v2342_v55 }
 0x500   :  { %v2054_v56 = vpop.f32.mrf.mxu0 }
 0x502   :  { %v2055_v59 = vpop.f32.mrf.mxu0 }
 0x503   :  { %v2056_v62 = vadd.f32 %v2055_v59, %v2054_v56 }
 0x504   :  { %v2057_v3 = vpop.f32.mrf.mxu0 }
 0x505   :  { %v1690_v5 = vadd.f32 %v2056_v62, %v1558_v61 }
 0x506   :  { %v2058_v4 = vpop.f32.mrf.mxu0 }
 0x507   :  { %v2059_v6 = vadd.f32 %v2058_v4, %v2057_v3  ;;  %v1703_v33 = vmul.f32 %v1690_v5, %v1690_v5 }
 0x509   :  { %v1693_v32 = vadd.f32 %v2059_v6, %v1558_v61 }
 0x50b   :  { %v1696_v34 = vadd.f32 %v1693_v32, %v1690_v5  ;;  %v1704_v35 = vmul.f32 %v1693_v32, %v1693_v32 }
 0x50d   :  { %v1697_v36 = vrot.slane %v1696_v34, 4  ;;  %v1705_v37 = vadd.f32 %v1704_v35, %v1703_v33 }
 0x50f   :  { %v1698_v38 = vadd.f32 %v1697_v36, %v1696_v34  ;;  %v1706_v39 = vrot.slane %v1705_v37, 4 }
 0x511   :  { %v1699_v40 = vrot.slane %v1698_v38, 2  ;;  %v1707_v41 = vadd.f32 %v1706_v39, %v1705_v37 }
 0x513   :  { %v1700_v42 = vadd.f32 %v1699_v40, %v1698_v38  ;;  %v1708_v43 = vrot.slane %v1707_v41, 2 }
 0x515   :  { %v1701_v44 = vrot.slane %v1700_v42, 1  ;;  %v1709_v45 = vadd.f32 %v1708_v43, %v1707_v41 }
 0x517   :  { %v1710_v0 = vrot.slane %v1709_v45, 1  ;;  %v1702_v46 = vadd.f32 %v1701_v44, %v1700_v42 }
 0x519   :  { %v1711_v47 = vadd.f32 %v1710_v0, %v1709_v45 }
 0x51b   :  { %v1712_v48 = vsel %vm257_vm0, %v1702_v46, %v1711_v47 }
 0x51c   :  { %v1713_v9 = vmul.f32 0.001953125, %v1712_v48 }
 0x51e   :  { %v1714_v13 = vpack.c.bf16 %v1713_v9, %v1713_v9 }
 0x520   :  { %v1715_v14 = vunpack.c.l.bf16 %v1714_v13 }
 0x522   :  { %v1716_v15 = vsub.f32 %v1713_v9, %v1715_v14 }
 0x524   :  { %v1717_v49 = vpack.c.bf16 %v1716_v15, %v1716_v15 }
 0x526   :  { %v1719_v17 = vrot.slane %v1717_v49, 7 }
 0x528   :  { %v1722_v50 = vsel %vm257_vm0, %v1714_v13, %v1719_v17 }
 0x529   :  { %2086 = vmatmul.mubr.bf16.vlgmr.msra.gmra.mxu0 %v1722_v50 }
 0x5e9   :  { %v1822_v18 = vpop.f32.mrf.mxu0 }
 0x5ea   :  { %v1829_v20 = vrot.slane %v1822_v18, 2 }
 0x5eb   :  { %v2087_v51 = vpop.f32.mrf.mxu0 }
 0x5ec   :  { %v1831_v19 = vadd.f32 %v1829_v20, %v1822_v18 }
 0x5ed   :  { %v1825_v21 = vpop.f32.mrf.mxu0 }
 0x5ee   :  { %v1832_v58 = vmul.f32 %v1831_v19, %v1831_v19 }
 0x5ef   :  { %v2088_v12 = vpop.f32.mrf.mxu0 }
 0x5f0   :  { %v1834_v10 = vrot.slane %v1832_v58, 7 }
 0x5f2   :  { %v1836_v22 = vsub.f32 %v1831_v19, %v1834_v10 }
 0x5f4   :  { %v1837_v23 = vadd.f32 1e-05, %v1836_v22 }
 0x5f6   :  { %2351 = vrsqrt.f32 %v1837_v23 }
 0x603   :  { %v2352_v24 = vpop.eup %2351 }
 0x604   :  { %v1839_v25 = vmul.f32 %v2352_v24, %v76_v57 }
 0x606   :  { %v1847_v63 = vrot.slane %v1839_v25, 1  ;;  %v1843_v27 = vrot.slane %v1839_v25, %v2906_v53 }
 0x608   :  { %v1849_v26 = vmul.f32 %v1847_v63, %v1831_v19  ;;  %v1844_v28 = vmul.f32 %v1843_v27, %v1690_v5  ;;  %v1845_v2 = vmul.f32 %v1843_v27, %v1693_v32 }
 0x60a   :  { %v1851_v1 = vrot.slane %v1849_v26, 6 }
 0x60c   :  { %v1853_v16 = vsub.f32 %v76_v57, %v1851_v1 }
 0x60e   :  { %v1857_v7 = vrot.slane %v1853_v16, %v2911_v60 }
 0x610   :  { %v1858_v8 = vadd.f32 %v1857_v7, %v1844_v28  ;;  %v1859_v11 = vadd.f32 %v1857_v7, %v1845_v2 }
 0x612   :  { %v1860_v30 = vadd.f32 %v2364_v29, %v1858_v8  ;;  %v1861_v52 = vadd.f32 %v2365_v31, %v1859_v11 }
 0x614   :  { %1862 = vst [vmem:[%s3209_s9] sm:$0xff] %v1860_v30  ;;  %1863 = vst [vmem:[%s3209_s9 + $0x8] sm:$0xff] %v1861_v52 }
 0x615   :  { %1868 = vsyncpa [#allocation3], 1 }
 0x616   :  { %1869 = vsyncpa [#allocation5], 1 }

</bundles_post_ra>
